<compile_context>
chip_gen: v7x
topology: tpu7x:2x2x1
jax: 0.10.0
libtpu: 0.0.40
codegen_flags: <defaults>
</compile_context>

<pallas_src>
import numpy as np
import jax
import jax.numpy as jnp
from jax import lax
from jax.experimental import pallas as pl
from jax.experimental.pallas import tpu as pltpu

# ----------------------------- model config ---------------------------------
KERNEL = (5, 3)          # kernel sizes of the two Conv1d layers
C1, C2 = 8, 4            # conv output channels
POOL = 30                # MaxPool1d(30, 30)
NCLS = 5                 # LazyLinear(5)

N = 2                    # batch
L = 66                   # input sequence length (N, 1, L)
L1 = L - KERNEL[0] + 1   # 62
L2 = L1 - KERNEL[1] + 1  # 60
P = L2 // POOL           # 2 pooled positions (floor behavior matches torch)
F = C2 * P               # 8 flattened features


# ------------------------------ Pallas kernel --------------------------------
def protein_seq_kernel(xt_ref, w1_ref, b1_ref, w2_ref, b2_ref, wfc_ref,
                       bfc_ref, out_ref):
    # xt_ref:  (K0, N, L1)      pre-shifted conv1 input windows (seq on lanes)
    # w1_ref:  (C1, K0)         conv1 weight
    # b1_ref:  (C1, 1)
    # w2_ref:  (K1, C1, C2, 1)  w2_ref[k, c, o, 0] = torch_w2[o, c, k]
    # b2_ref:  (C2, 1)
    # wfc_ref: (P, NCLS, C2)    wfc_ref[p, j, o] = torch_wfc[j, o*P + p]
    # bfc_ref: (1, NCLS)
    # out_ref: (N, NCLS)

    # ---- Conv1d(1 -> C1, K0): pure VPU MACs, channels on sublanes ----------
    h1 = jnp.broadcast_to(b1_ref[...][None, :, :], (N, C1, L1))
    for k in range(KERNEL[0]):
        xk = xt_ref[k]                         # (N, L1)
        wk = w1_ref[:, k:k + 1]                # (C1, 1)
        h1 = h1 + xk[:, None, :] * wk[None, :, :]
    h1 = jnp.maximum(h1, 0.0)                  # ReLU

    # ---- Conv1d(C1 -> C2, K1): unrolled VPU MACs over the 8 input channels -
    h2 = jnp.broadcast_to(b2_ref[...][None, :, :], (N, C2, L2))
    for k in range(KERNEL[1]):
        h1k = h1[:, :, k:k + L2]               # (N, C1, L2) shifted window
        for c in range(C1):
            xc = h1k[:, c, :]                  # (N, L2) single input channel
            wck = w2_ref[k, c]                 # (C2, 1) per-out-channel weights
            h2 = h2 + xc[:, None, :] * wck[None, :, :]
    h2 = jnp.maximum(h2, 0.0)                  # ReLU

    # ---- MaxPool1d(30,30) fused with Linear(F -> NCLS): no concatenate -----
    logits = jnp.broadcast_to(bfc_ref[...], (N, NCLS))
    for p in range(P):
        pooled = jnp.max(h2[:, :, p * POOL:(p + 1) * POOL], axis=-1)   # (N, C2)
        wp = wfc_ref[p]                                                # (NCLS, C2)
        logits = logits + jnp.sum(pooled[:, None, :] * wp[None, :, :], axis=-1)

    # ---- Softmax over classes (lane axis) -----------------------------------
    m = jnp.max(logits, axis=1, keepdims=True)
    e = jnp.exp(logits - m)
    out_ref[...] = e / jnp.sum(e, axis=1, keepdims=True)


def protein_seq_forward(x_ncl, w1, b1, w2, b2, wfc, bfc):
    """x_ncl: (N, 1, L) float32; weights in PyTorch convention:
       w1 (C1, 1, K0), b1 (C1,), w2 (C2, C1, K1), b2 (C2,),
       wfc (NCLS, F) with F indexed channel-major (o*P + p), bfc (NCLS,)."""
    x2d = x_ncl[:, 0, :]                                   # (N, L)
    # hoist conv1 tap windows out of the kernel: (K0, N, L1)
    x_taps = jnp.stack([x2d[:, k:k + L1] for k in range(KERNEL[0])], axis=0)

    w1_k = w1[:, 0, :]                                     # (C1, K0)
    b1_k = b1[:, None]                                     # (C1, 1)
    w2_k = jnp.transpose(w2, (2, 1, 0))[..., None]         # (K1, C1, C2, 1)
    b2_k = b2[:, None]                                     # (C2, 1)
    # torch Flatten of (N, C2, P) is channel-major (f = o*P + p)
    wfc_k = jnp.transpose(wfc.reshape(NCLS, C2, P), (2, 0, 1))   # (P, NCLS, C2)
    bfc_k = bfc[None, :]                                   # (1, NCLS)

    vmem = pl.BlockSpec(memory_space=pltpu.MemorySpace.VMEM)
    return pl.pallas_call(
        protein_seq_kernel,
        out_shape=jax.ShapeDtypeStruct((N, NCLS), jnp.float32),
        in_specs=[vmem] * 7,
        out_specs=vmem,
    )(x_taps, w1_k, b1_k, w2_k, b2_k, wfc_k, bfc_k)


# --------------------------- pure-JAX reference ------------------------------
def reference(x_ncl, w1, b1, w2, b2, wfc, bfc):
    dn = ('NCH', 'OIH', 'NCH')
    h1 = lax.conv_general_dilated(x_ncl, w1, (1,), 'VALID',
                                  dimension_numbers=dn) + b1[None, :, None]
    h1 = jnp.maximum(h1, 0.0)
    h2 = lax.conv_general_dilated(h1, w2, (1,), 'VALID',
                                  dimension_numbers=dn) + b2[None, :, None]
    h2 = jnp.maximum(h2, 0.0)
    pooled = jnp.max(h2.reshape(N, C2, P, POOL), axis=-1)  # (N, C2, P)
    feats = pooled.reshape(N, F)                           # torch Flatten order
    logits = feats @ wfc.T + bfc[None, :]
    return jax.nn.softmax(logits, axis=1)


# ---------------------------------- main -------------------------------------
if __name__ == "__main__":
    key = jax.random.PRNGKey(0)
    kx, k1, k2, k3, k4, k5, k6 = jax.random.split(key, 7)

    x = jax.random.normal(kx, (N, 1, L), dtype=jnp.float32)

    # deterministic synthetic parameters (PyTorch weight conventions)
    w1 = 0.2 * jax.random.normal(k1, (C1, 1, KERNEL[0]), dtype=jnp.float32)
    b1 = 0.1 * jax.random.normal(k2, (C1,), dtype=jnp.float32)
    w2 = 0.2 * jax.random.normal(k3, (C2, C1, KERNEL[1]), dtype=jnp.float32)
    b2 = 0.1 * jax.random.normal(k4, (C2,), dtype=jnp.float32)
    wfc = 0.2 * jax.random.normal(k5, (NCLS, F), dtype=jnp.float32)
    bfc = 0.1 * jax.random.normal(k6, (NCLS,), dtype=jnp.float32)

    out = protein_seq_forward(x, w1, b1, w2, b2, wfc, bfc)
    out = jax.block_until_ready(out)

    ref = reference(x, w1, b1, w2, b2, wfc, bfc)
    assert out.shape == (N, NCLS)
    assert np.allclose(np.asarray(out), np.asarray(ref), atol=1e-5, rtol=1e-5)
    assert np.allclose(np.asarray(out).sum(axis=1), 1.0, atol=1e-5)

    print("KERNEL_OK")
</pallas_src>

<mosaic_0001>
module attributes {stable_mosaic.version = 11 : i64} {
  func.func @protein_seq_kernel(%arg0: memref<5x2x62xf32, #tpu.memory_space<vmem>>, %arg1: memref<8x5xf32, #tpu.memory_space<vmem>>, %arg2: memref<8x1xf32, #tpu.memory_space<vmem>>, %arg3: memref<3x8x4x1xf32, #tpu.memory_space<vmem>>, %arg4: memref<4x1xf32, #tpu.memory_space<vmem>>, %arg5: memref<2x5x4xf32, #tpu.memory_space<vmem>>, %arg6: memref<1x5xf32, #tpu.memory_space<vmem>>, %arg7: memref<2x5xf32, #tpu.memory_space<vmem>>) attributes {dimension_semantics = [], scalar_prefetch = 0 : i64, scratch_operands = 0 : i64, tpu.core_type = #tpu.core_type<tc>} {
    %c0 = arith.constant 0 : index
    %c0_0 = arith.constant 0 : index
    %0 = vector.load %arg2[%c0, %c0_0] : memref<8x1xf32, #tpu.memory_space<vmem>>, vector<8x1xf32>
    %1 = vector.shape_cast %0 : vector<8x1xf32> to vector<1x8x1xf32>
    %2 = vector.shape_cast %1 : vector<1x8x1xf32> to vector<1x8x1xf32>
    %3 = vector.broadcast %2 : vector<1x8x1xf32> to vector<2x8x62xf32>
    %c0_1 = arith.constant 0 : index
    %c0_2 = arith.constant 0 : index
    %c0_3 = arith.constant 0 : index
    %4 = vector.load %arg0[%c0_1, %c0_2, %c0_3] : memref<5x2x62xf32, #tpu.memory_space<vmem>>, vector<1x2x62xf32>
    %5 = vector.shape_cast %4 : vector<1x2x62xf32> to vector<2x62xf32>
    %c0_4 = arith.constant 0 : index
    %c0_5 = arith.constant 0 : index
    %6 = vector.load %arg1[%c0_4, %c0_5] : memref<8x5xf32, #tpu.memory_space<vmem>>, vector<8x1xf32>
    %7 = vector.shape_cast %5 : vector<2x62xf32> to vector<2x1x62xf32>
    %8 = vector.shape_cast %6 : vector<8x1xf32> to vector<1x8x1xf32>
    %9 = vector.broadcast %7 : vector<2x1x62xf32> to vector<2x8x62xf32>
    %10 = vector.broadcast %8 : vector<1x8x1xf32> to vector<2x8x62xf32>
    %11 = arith.mulf %9, %10 : vector<2x8x62xf32>
    %12 = arith.addf %3, %11 : vector<2x8x62xf32>
    %c1 = arith.constant 1 : index
    %c0_6 = arith.constant 0 : index
    %c0_7 = arith.constant 0 : index
    %13 = vector.load %arg0[%c1, %c0_6, %c0_7] : memref<5x2x62xf32, #tpu.memory_space<vmem>>, vector<1x2x62xf32>
    %14 = vector.shape_cast %13 : vector<1x2x62xf32> to vector<2x62xf32>
    %c0_8 = arith.constant 0 : index
    %c1_9 = arith.constant 1 : index
    %15 = vector.load %arg1[%c0_8, %c1_9] : memref<8x5xf32, #tpu.memory_space<vmem>>, vector<8x1xf32>
    %16 = vector.shape_cast %14 : vector<2x62xf32> to vector<2x1x62xf32>
    %17 = vector.shape_cast %15 : vector<8x1xf32> to vector<1x8x1xf32>
    %18 = vector.broadcast %16 : vector<2x1x62xf32> to vector<2x8x62xf32>
    %19 = vector.broadcast %17 : vector<1x8x1xf32> to vector<2x8x62xf32>
    %20 = arith.mulf %18, %19 : vector<2x8x62xf32>
    %21 = arith.addf %12, %20 : vector<2x8x62xf32>
    %c2 = arith.constant 2 : index
    %c0_10 = arith.constant 0 : index
    %c0_11 = arith.constant 0 : index
    %22 = vector.load %arg0[%c2, %c0_10, %c0_11] : memref<5x2x62xf32, #tpu.memory_space<vmem>>, vector<1x2x62xf32>
    %23 = vector.shape_cast %22 : vector<1x2x62xf32> to vector<2x62xf32>
    %c0_12 = arith.constant 0 : index
    %c2_13 = arith.constant 2 : index
    %24 = vector.load %arg1[%c0_12, %c2_13] : memref<8x5xf32, #tpu.memory_space<vmem>>, vector<8x1xf32>
    %25 = vector.shape_cast %23 : vector<2x62xf32> to vector<2x1x62xf32>
    %26 = vector.shape_cast %24 : vector<8x1xf32> to vector<1x8x1xf32>
    %27 = vector.broadcast %25 : vector<2x1x62xf32> to vector<2x8x62xf32>
    %28 = vector.broadcast %26 : vector<1x8x1xf32> to vector<2x8x62xf32>
    %29 = arith.mulf %27, %28 : vector<2x8x62xf32>
    %30 = arith.addf %21, %29 : vector<2x8x62xf32>
    %c3 = arith.constant 3 : index
    %c0_14 = arith.constant 0 : index
    %c0_15 = arith.constant 0 : index
    %31 = vector.load %arg0[%c3, %c0_14, %c0_15] : memref<5x2x62xf32, #tpu.memory_space<vmem>>, vector<1x2x62xf32>
    %32 = vector.shape_cast %31 : vector<1x2x62xf32> to vector<2x62xf32>
    %c0_16 = arith.constant 0 : index
    %c3_17 = arith.constant 3 : index
    %33 = vector.load %arg1[%c0_16, %c3_17] : memref<8x5xf32, #tpu.memory_space<vmem>>, vector<8x1xf32>
    %34 = vector.shape_cast %32 : vector<2x62xf32> to vector<2x1x62xf32>
    %35 = vector.shape_cast %33 : vector<8x1xf32> to vector<1x8x1xf32>
    %36 = vector.broadcast %34 : vector<2x1x62xf32> to vector<2x8x62xf32>
    %37 = vector.broadcast %35 : vector<1x8x1xf32> to vector<2x8x62xf32>
    %38 = arith.mulf %36, %37 : vector<2x8x62xf32>
    %39 = arith.addf %30, %38 : vector<2x8x62xf32>
    %c4 = arith.constant 4 : index
    %c0_18 = arith.constant 0 : index
    %c0_19 = arith.constant 0 : index
    %40 = vector.load %arg0[%c4, %c0_18, %c0_19] : memref<5x2x62xf32, #tpu.memory_space<vmem>>, vector<1x2x62xf32>
    %41 = vector.shape_cast %40 : vector<1x2x62xf32> to vector<2x62xf32>
    %c0_20 = arith.constant 0 : index
    %c4_21 = arith.constant 4 : index
    %42 = vector.load %arg1[%c0_20, %c4_21] : memref<8x5xf32, #tpu.memory_space<vmem>>, vector<8x1xf32>
    %43 = vector.shape_cast %41 : vector<2x62xf32> to vector<2x1x62xf32>
    %44 = vector.shape_cast %42 : vector<8x1xf32> to vector<1x8x1xf32>
    %45 = vector.broadcast %43 : vector<2x1x62xf32> to vector<2x8x62xf32>
    %46 = vector.broadcast %44 : vector<1x8x1xf32> to vector<2x8x62xf32>
    %47 = arith.mulf %45, %46 : vector<2x8x62xf32>
    %48 = arith.addf %39, %47 : vector<2x8x62xf32>
    %cst = arith.constant 0.000000e+00 : f32
    %49 = vector.broadcast %cst : f32 to vector<2x8x62xf32>
    %50 = arith.maximumf %48, %49 : vector<2x8x62xf32>
    %c0_22 = arith.constant 0 : index
    %c0_23 = arith.constant 0 : index
    %51 = vector.load %arg4[%c0_22, %c0_23] : memref<4x1xf32, #tpu.memory_space<vmem>>, vector<4x1xf32>
    %52 = vector.shape_cast %51 : vector<4x1xf32> to vector<1x4x1xf32>
    %53 = vector.shape_cast %52 : vector<1x4x1xf32> to vector<1x4x1xf32>
    %54 = vector.broadcast %53 : vector<1x4x1xf32> to vector<2x4x60xf32>
    %55 = vector.extract_strided_slice %50 {offsets = [0, 0, 0], sizes = [2, 8, 60], strides = [1, 1, 1]} : vector<2x8x62xf32> to vector<2x8x60xf32>
    %56 = vector.extract_strided_slice %55 {offsets = [0, 0, 0], sizes = [2, 1, 60], strides = [1, 1, 1]} : vector<2x8x60xf32> to vector<2x1x60xf32>
    %57 = vector.shape_cast %56 : vector<2x1x60xf32> to vector<2x60xf32>
    %c0_24 = arith.constant 0 : index
    %c0_25 = arith.constant 0 : index
    %c0_26 = arith.constant 0 : index
    %c0_27 = arith.constant 0 : index
    %58 = vector.load %arg3[%c0_24, %c0_25, %c0_26, %c0_27] : memref<3x8x4x1xf32, #tpu.memory_space<vmem>>, vector<1x1x4x1xf32>
    %59 = vector.shape_cast %58 : vector<1x1x4x1xf32> to vector<4x1xf32>
    %60 = vector.shape_cast %57 : vector<2x60xf32> to vector<2x1x60xf32>
    %61 = vector.shape_cast %59 : vector<4x1xf32> to vector<1x4x1xf32>
    %62 = vector.broadcast %60 : vector<2x1x60xf32> to vector<2x4x60xf32>
    %63 = vector.broadcast %61 : vector<1x4x1xf32> to vector<2x4x60xf32>
    %64 = arith.mulf %62, %63 : vector<2x4x60xf32>
    %65 = arith.addf %54, %64 : vector<2x4x60xf32>
    %66 = vector.extract_strided_slice %55 {offsets = [0, 1, 0], sizes = [2, 1, 60], strides = [1, 1, 1]} : vector<2x8x60xf32> to vector<2x1x60xf32>
    %67 = vector.shape_cast %66 : vector<2x1x60xf32> to vector<2x60xf32>
    %c0_28 = arith.constant 0 : index
    %c1_29 = arith.constant 1 : index
    %c0_30 = arith.constant 0 : index
    %c0_31 = arith.constant 0 : index
    %68 = vector.load %arg3[%c0_28, %c1_29, %c0_30, %c0_31] : memref<3x8x4x1xf32, #tpu.memory_space<vmem>>, vector<1x1x4x1xf32>
    %69 = vector.shape_cast %68 : vector<1x1x4x1xf32> to vector<4x1xf32>
    %70 = vector.shape_cast %67 : vector<2x60xf32> to vector<2x1x60xf32>
    %71 = vector.shape_cast %69 : vector<4x1xf32> to vector<1x4x1xf32>
    %72 = vector.broadcast %70 : vector<2x1x60xf32> to vector<2x4x60xf32>
    %73 = vector.broadcast %71 : vector<1x4x1xf32> to vector<2x4x60xf32>
    %74 = arith.mulf %72, %73 : vector<2x4x60xf32>
    %75 = arith.addf %65, %74 : vector<2x4x60xf32>
    %76 = vector.extract_strided_slice %55 {offsets = [0, 2, 0], sizes = [2, 1, 60], strides = [1, 1, 1]} : vector<2x8x60xf32> to vector<2x1x60xf32>
    %77 = vector.shape_cast %76 : vector<2x1x60xf32> to vector<2x60xf32>
    %c0_32 = arith.constant 0 : index
    %c2_33 = arith.constant 2 : index
    %c0_34 = arith.constant 0 : index
    %c0_35 = arith.constant 0 : index
    %78 = vector.load %arg3[%c0_32, %c2_33, %c0_34, %c0_35] : memref<3x8x4x1xf32, #tpu.memory_space<vmem>>, vector<1x1x4x1xf32>
    %79 = vector.shape_cast %78 : vector<1x1x4x1xf32> to vector<4x1xf32>
    %80 = vector.shape_cast %77 : vector<2x60xf32> to vector<2x1x60xf32>
    %81 = vector.shape_cast %79 : vector<4x1xf32> to vector<1x4x1xf32>
    %82 = vector.broadcast %80 : vector<2x1x60xf32> to vector<2x4x60xf32>
    %83 = vector.broadcast %81 : vector<1x4x1xf32> to vector<2x4x60xf32>
    %84 = arith.mulf %82, %83 : vector<2x4x60xf32>
    %85 = arith.addf %75, %84 : vector<2x4x60xf32>
    %86 = vector.extract_strided_slice %55 {offsets = [0, 3, 0], sizes = [2, 1, 60], strides = [1, 1, 1]} : vector<2x8x60xf32> to vector<2x1x60xf32>
    %87 = vector.shape_cast %86 : vector<2x1x60xf32> to vector<2x60xf32>
    %c0_36 = arith.constant 0 : index
    %c3_37 = arith.constant 3 : index
    %c0_38 = arith.constant 0 : index
    %c0_39 = arith.constant 0 : index
    %88 = vector.load %arg3[%c0_36, %c3_37, %c0_38, %c0_39] : memref<3x8x4x1xf32, #tpu.memory_space<vmem>>, vector<1x1x4x1xf32>
    %89 = vector.shape_cast %88 : vector<1x1x4x1xf32> to vector<4x1xf32>
    %90 = vector.shape_cast %87 : vector<2x60xf32> to vector<2x1x60xf32>
    %91 = vector.shape_cast %89 : vector<4x1xf32> to vector<1x4x1xf32>
    %92 = vector.broadcast %90 : vector<2x1x60xf32> to vector<2x4x60xf32>
    %93 = vector.broadcast %91 : vector<1x4x1xf32> to vector<2x4x60xf32>
    %94 = arith.mulf %92, %93 : vector<2x4x60xf32>
    %95 = arith.addf %85, %94 : vector<2x4x60xf32>
    %96 = vector.extract_strided_slice %55 {offsets = [0, 4, 0], sizes = [2, 1, 60], strides = [1, 1, 1]} : vector<2x8x60xf32> to vector<2x1x60xf32>
    %97 = vector.shape_cast %96 : vector<2x1x60xf32> to vector<2x60xf32>
    %c0_40 = arith.constant 0 : index
    %c4_41 = arith.constant 4 : index
    %c0_42 = arith.constant 0 : index
    %c0_43 = arith.constant 0 : index
    %98 = vector.load %arg3[%c0_40, %c4_41, %c0_42, %c0_43] : memref<3x8x4x1xf32, #tpu.memory_space<vmem>>, vector<1x1x4x1xf32>
    %99 = vector.shape_cast %98 : vector<1x1x4x1xf32> to vector<4x1xf32>
    %100 = vector.shape_cast %97 : vector<2x60xf32> to vector<2x1x60xf32>
    %101 = vector.shape_cast %99 : vector<4x1xf32> to vector<1x4x1xf32>
    %102 = vector.broadcast %100 : vector<2x1x60xf32> to vector<2x4x60xf32>
    %103 = vector.broadcast %101 : vector<1x4x1xf32> to vector<2x4x60xf32>
    %104 = arith.mulf %102, %103 : vector<2x4x60xf32>
    %105 = arith.addf %95, %104 : vector<2x4x60xf32>
    %106 = vector.extract_strided_slice %55 {offsets = [0, 5, 0], sizes = [2, 1, 60], strides = [1, 1, 1]} : vector<2x8x60xf32> to vector<2x1x60xf32>
    %107 = vector.shape_cast %106 : vector<2x1x60xf32> to vector<2x60xf32>
    %c0_44 = arith.constant 0 : index
    %c5 = arith.constant 5 : index
    %c0_45 = arith.constant 0 : index
    %c0_46 = arith.constant 0 : index
    %108 = vector.load %arg3[%c0_44, %c5, %c0_45, %c0_46] : memref<3x8x4x1xf32, #tpu.memory_space<vmem>>, vector<1x1x4x1xf32>
    %109 = vector.shape_cast %108 : vector<1x1x4x1xf32> to vector<4x1xf32>
    %110 = vector.shape_cast %107 : vector<2x60xf32> to vector<2x1x60xf32>
    %111 = vector.shape_cast %109 : vector<4x1xf32> to vector<1x4x1xf32>
    %112 = vector.broadcast %110 : vector<2x1x60xf32> to vector<2x4x60xf32>
    %113 = vector.broadcast %111 : vector<1x4x1xf32> to vector<2x4x60xf32>
    %114 = arith.mulf %112, %113 : vector<2x4x60xf32>
    %115 = arith.addf %105, %114 : vector<2x4x60xf32>
    %116 = vector.extract_strided_slice %55 {offsets = [0, 6, 0], sizes = [2, 1, 60], strides = [1, 1, 1]} : vector<2x8x60xf32> to vector<2x1x60xf32>
    %117 = vector.shape_cast %116 : vector<2x1x60xf32> to vector<2x60xf32>
    %c0_47 = arith.constant 0 : index
    %c6 = arith.constant 6 : index
    %c0_48 = arith.constant 0 : index
    %c0_49 = arith.constant 0 : index
    %118 = vector.load %arg3[%c0_47, %c6, %c0_48, %c0_49] : memref<3x8x4x1xf32, #tpu.memory_space<vmem>>, vector<1x1x4x1xf32>
    %119 = vector.shape_cast %118 : vector<1x1x4x1xf32> to vector<4x1xf32>
    %120 = vector.shape_cast %117 : vector<2x60xf32> to vector<2x1x60xf32>
    %121 = vector.shape_cast %119 : vector<4x1xf32> to vector<1x4x1xf32>
    %122 = vector.broadcast %120 : vector<2x1x60xf32> to vector<2x4x60xf32>
    %123 = vector.broadcast %121 : vector<1x4x1xf32> to vector<2x4x60xf32>
    %124 = arith.mulf %122, %123 : vector<2x4x60xf32>
    %125 = arith.addf %115, %124 : vector<2x4x60xf32>
    %126 = vector.extract_strided_slice %55 {offsets = [0, 7, 0], sizes = [2, 1, 60], strides = [1, 1, 1]} : vector<2x8x60xf32> to vector<2x1x60xf32>
    %127 = vector.shape_cast %126 : vector<2x1x60xf32> to vector<2x60xf32>
    %c0_50 = arith.constant 0 : index
    %c7 = arith.constant 7 : index
    %c0_51 = arith.constant 0 : index
    %c0_52 = arith.constant 0 : index
    %128 = vector.load %arg3[%c0_50, %c7, %c0_51, %c0_52] : memref<3x8x4x1xf32, #tpu.memory_space<vmem>>, vector<1x1x4x1xf32>
    %129 = vector.shape_cast %128 : vector<1x1x4x1xf32> to vector<4x1xf32>
    %130 = vector.shape_cast %127 : vector<2x60xf32> to vector<2x1x60xf32>
    %131 = vector.shape_cast %129 : vector<4x1xf32> to vector<1x4x1xf32>
    %132 = vector.broadcast %130 : vector<2x1x60xf32> to vector<2x4x60xf32>
    %133 = vector.broadcast %131 : vector<1x4x1xf32> to vector<2x4x60xf32>
    %134 = arith.mulf %132, %133 : vector<2x4x60xf32>
    %135 = arith.addf %125, %134 : vector<2x4x60xf32>
    %136 = vector.extract_strided_slice %50 {offsets = [0, 0, 1], sizes = [2, 8, 60], strides = [1, 1, 1]} : vector<2x8x62xf32> to vector<2x8x60xf32>
    %137 = vector.extract_strided_slice %136 {offsets = [0, 0, 0], sizes = [2, 1, 60], strides = [1, 1, 1]} : vector<2x8x60xf32> to vector<2x1x60xf32>
    %138 = vector.shape_cast %137 : vector<2x1x60xf32> to vector<2x60xf32>
    %c1_53 = arith.constant 1 : index
    %c0_54 = arith.constant 0 : index
    %c0_55 = arith.constant 0 : index
    %c0_56 = arith.constant 0 : index
    %139 = vector.load %arg3[%c1_53, %c0_54, %c0_55, %c0_56] : memref<3x8x4x1xf32, #tpu.memory_space<vmem>>, vector<1x1x4x1xf32>
    %140 = vector.shape_cast %139 : vector<1x1x4x1xf32> to vector<4x1xf32>
    %141 = vector.shape_cast %138 : vector<2x60xf32> to vector<2x1x60xf32>
    %142 = vector.shape_cast %140 : vector<4x1xf32> to vector<1x4x1xf32>
    %143 = vector.broadcast %141 : vector<2x1x60xf32> to vector<2x4x60xf32>
    %144 = vector.broadcast %142 : vector<1x4x1xf32> to vector<2x4x60xf32>
    %145 = arith.mulf %143, %144 : vector<2x4x60xf32>
    %146 = arith.addf %135, %145 : vector<2x4x60xf32>
    %147 = vector.extract_strided_slice %136 {offsets = [0, 1, 0], sizes = [2, 1, 60], strides = [1, 1, 1]} : vector<2x8x60xf32> to vector<2x1x60xf32>
    %148 = vector.shape_cast %147 : vector<2x1x60xf32> to vector<2x60xf32>
    %c1_57 = arith.constant 1 : index
    %c1_58 = arith.constant 1 : index
    %c0_59 = arith.constant 0 : index
    %c0_60 = arith.constant 0 : index
    %149 = vector.load %arg3[%c1_57, %c1_58, %c0_59, %c0_60] : memref<3x8x4x1xf32, #tpu.memory_space<vmem>>, vector<1x1x4x1xf32>
    %150 = vector.shape_cast %149 : vector<1x1x4x1xf32> to vector<4x1xf32>
    %151 = vector.shape_cast %148 : vector<2x60xf32> to vector<2x1x60xf32>
    %152 = vector.shape_cast %150 : vector<4x1xf32> to vector<1x4x1xf32>
    %153 = vector.broadcast %151 : vector<2x1x60xf32> to vector<2x4x60xf32>
    %154 = vector.broadcast %152 : vector<1x4x1xf32> to vector<2x4x60xf32>
    %155 = arith.mulf %153, %154 : vector<2x4x60xf32>
    %156 = arith.addf %146, %155 : vector<2x4x60xf32>
    %157 = vector.extract_strided_slice %136 {offsets = [0, 2, 0], sizes = [2, 1, 60], strides = [1, 1, 1]} : vector<2x8x60xf32> to vector<2x1x60xf32>
    %158 = vector.shape_cast %157 : vector<2x1x60xf32> to vector<2x60xf32>
    %c1_61 = arith.constant 1 : index
    %c2_62 = arith.constant 2 : index
    %c0_63 = arith.constant 0 : index
    %c0_64 = arith.constant 0 : index
    %159 = vector.load %arg3[%c1_61, %c2_62, %c0_63, %c0_64] : memref<3x8x4x1xf32, #tpu.memory_space<vmem>>, vector<1x1x4x1xf32>
    %160 = vector.shape_cast %159 : vector<1x1x4x1xf32> to vector<4x1xf32>
    %161 = vector.shape_cast %158 : vector<2x60xf32> to vector<2x1x60xf32>
    %162 = vector.shape_cast %160 : vector<4x1xf32> to vector<1x4x1xf32>
    %163 = vector.broadcast %161 : vector<2x1x60xf32> to vector<2x4x60xf32>
    %164 = vector.broadcast %162 : vector<1x4x1xf32> to vector<2x4x60xf32>
    %165 = arith.mulf %163, %164 : vector<2x4x60xf32>
    %166 = arith.addf %156, %165 : vector<2x4x60xf32>
    %167 = vector.extract_strided_slice %136 {offsets = [0, 3, 0], sizes = [2, 1, 60], strides = [1, 1, 1]} : vector<2x8x60xf32> to vector<2x1x60xf32>
    %168 = vector.shape_cast %167 : vector<2x1x60xf32> to vector<2x60xf32>
    %c1_65 = arith.constant 1 : index
    %c3_66 = arith.constant 3 : index
    %c0_67 = arith.constant 0 : index
    %c0_68 = arith.constant 0 : index
    %169 = vector.load %arg3[%c1_65, %c3_66, %c0_67, %c0_68] : memref<3x8x4x1xf32, #tpu.memory_space<vmem>>, vector<1x1x4x1xf32>
    %170 = vector.shape_cast %169 : vector<1x1x4x1xf32> to vector<4x1xf32>
    %171 = vector.shape_cast %168 : vector<2x60xf32> to vector<2x1x60xf32>
    %172 = vector.shape_cast %170 : vector<4x1xf32> to vector<1x4x1xf32>
    %173 = vector.broadcast %171 : vector<2x1x60xf32> to vector<2x4x60xf32>
    %174 = vector.broadcast %172 : vector<1x4x1xf32> to vector<2x4x60xf32>
    %175 = arith.mulf %173, %174 : vector<2x4x60xf32>
    %176 = arith.addf %166, %175 : vector<2x4x60xf32>
    %177 = vector.extract_strided_slice %136 {offsets = [0, 4, 0], sizes = [2, 1, 60], strides = [1, 1, 1]} : vector<2x8x60xf32> to vector<2x1x60xf32>
    %178 = vector.shape_cast %177 : vector<2x1x60xf32> to vector<2x60xf32>
    %c1_69 = arith.constant 1 : index
    %c4_70 = arith.constant 4 : index
    %c0_71 = arith.constant 0 : index
    %c0_72 = arith.constant 0 : index
    %179 = vector.load %arg3[%c1_69, %c4_70, %c0_71, %c0_72] : memref<3x8x4x1xf32, #tpu.memory_space<vmem>>, vector<1x1x4x1xf32>
    %180 = vector.shape_cast %179 : vector<1x1x4x1xf32> to vector<4x1xf32>
    %181 = vector.shape_cast %178 : vector<2x60xf32> to vector<2x1x60xf32>
    %182 = vector.shape_cast %180 : vector<4x1xf32> to vector<1x4x1xf32>
    %183 = vector.broadcast %181 : vector<2x1x60xf32> to vector<2x4x60xf32>
    %184 = vector.broadcast %182 : vector<1x4x1xf32> to vector<2x4x60xf32>
    %185 = arith.mulf %183, %184 : vector<2x4x60xf32>
    %186 = arith.addf %176, %185 : vector<2x4x60xf32>
    %187 = vector.extract_strided_slice %136 {offsets = [0, 5, 0], sizes = [2, 1, 60], strides = [1, 1, 1]} : vector<2x8x60xf32> to vector<2x1x60xf32>
    %188 = vector.shape_cast %187 : vector<2x1x60xf32> to vector<2x60xf32>
    %c1_73 = arith.constant 1 : index
    %c5_74 = arith.constant 5 : index
    %c0_75 = arith.constant 0 : index
    %c0_76 = arith.constant 0 : index
    %189 = vector.load %arg3[%c1_73, %c5_74, %c0_75, %c0_76] : memref<3x8x4x1xf32, #tpu.memory_space<vmem>>, vector<1x1x4x1xf32>
    %190 = vector.shape_cast %189 : vector<1x1x4x1xf32> to vector<4x1xf32>
    %191 = vector.shape_cast %188 : vector<2x60xf32> to vector<2x1x60xf32>
    %192 = vector.shape_cast %190 : vector<4x1xf32> to vector<1x4x1xf32>
    %193 = vector.broadcast %191 : vector<2x1x60xf32> to vector<2x4x60xf32>
    %194 = vector.broadcast %192 : vector<1x4x1xf32> to vector<2x4x60xf32>
    %195 = arith.mulf %193, %194 : vector<2x4x60xf32>
    %196 = arith.addf %186, %195 : vector<2x4x60xf32>
    %197 = vector.extract_strided_slice %136 {offsets = [0, 6, 0], sizes = [2, 1, 60], strides = [1, 1, 1]} : vector<2x8x60xf32> to vector<2x1x60xf32>
    %198 = vector.shape_cast %197 : vector<2x1x60xf32> to vector<2x60xf32>
    %c1_77 = arith.constant 1 : index
    %c6_78 = arith.constant 6 : index
    %c0_79 = arith.constant 0 : index
    %c0_80 = arith.constant 0 : index
    %199 = vector.load %arg3[%c1_77, %c6_78, %c0_79, %c0_80] : memref<3x8x4x1xf32, #tpu.memory_space<vmem>>, vector<1x1x4x1xf32>
    %200 = vector.shape_cast %199 : vector<1x1x4x1xf32> to vector<4x1xf32>
    %201 = vector.shape_cast %198 : vector<2x60xf32> to vector<2x1x60xf32>
    %202 = vector.shape_cast %200 : vector<4x1xf32> to vector<1x4x1xf32>
    %203 = vector.broadcast %201 : vector<2x1x60xf32> to vector<2x4x60xf32>
    %204 = vector.broadcast %202 : vector<1x4x1xf32> to vector<2x4x60xf32>
    %205 = arith.mulf %203, %204 : vector<2x4x60xf32>
    %206 = arith.addf %196, %205 : vector<2x4x60xf32>
    %207 = vector.extract_strided_slice %136 {offsets = [0, 7, 0], sizes = [2, 1, 60], strides = [1, 1, 1]} : vector<2x8x60xf32> to vector<2x1x60xf32>
    %208 = vector.shape_cast %207 : vector<2x1x60xf32> to vector<2x60xf32>
    %c1_81 = arith.constant 1 : index
    %c7_82 = arith.constant 7 : index
    %c0_83 = arith.constant 0 : index
    %c0_84 = arith.constant 0 : index
    %209 = vector.load %arg3[%c1_81, %c7_82, %c0_83, %c0_84] : memref<3x8x4x1xf32, #tpu.memory_space<vmem>>, vector<1x1x4x1xf32>
    %210 = vector.shape_cast %209 : vector<1x1x4x1xf32> to vector<4x1xf32>
    %211 = vector.shape_cast %208 : vector<2x60xf32> to vector<2x1x60xf32>
    %212 = vector.shape_cast %210 : vector<4x1xf32> to vector<1x4x1xf32>
    %213 = vector.broadcast %211 : vector<2x1x60xf32> to vector<2x4x60xf32>
    %214 = vector.broadcast %212 : vector<1x4x1xf32> to vector<2x4x60xf32>
    %215 = arith.mulf %213, %214 : vector<2x4x60xf32>
    %216 = arith.addf %206, %215 : vector<2x4x60xf32>
    %217 = vector.extract_strided_slice %50 {offsets = [0, 0, 2], sizes = [2, 8, 60], strides = [1, 1, 1]} : vector<2x8x62xf32> to vector<2x8x60xf32>
    %218 = vector.extract_strided_slice %217 {offsets = [0, 0, 0], sizes = [2, 1, 60], strides = [1, 1, 1]} : vector<2x8x60xf32> to vector<2x1x60xf32>
    %219 = vector.shape_cast %218 : vector<2x1x60xf32> to vector<2x60xf32>
    %c2_85 = arith.constant 2 : index
    %c0_86 = arith.constant 0 : index
    %c0_87 = arith.constant 0 : index
    %c0_88 = arith.constant 0 : index
    %220 = vector.load %arg3[%c2_85, %c0_86, %c0_87, %c0_88] : memref<3x8x4x1xf32, #tpu.memory_space<vmem>>, vector<1x1x4x1xf32>
    %221 = vector.shape_cast %220 : vector<1x1x4x1xf32> to vector<4x1xf32>
    %222 = vector.shape_cast %219 : vector<2x60xf32> to vector<2x1x60xf32>
    %223 = vector.shape_cast %221 : vector<4x1xf32> to vector<1x4x1xf32>
    %224 = vector.broadcast %222 : vector<2x1x60xf32> to vector<2x4x60xf32>
    %225 = vector.broadcast %223 : vector<1x4x1xf32> to vector<2x4x60xf32>
    %226 = arith.mulf %224, %225 : vector<2x4x60xf32>
    %227 = arith.addf %216, %226 : vector<2x4x60xf32>
    %228 = vector.extract_strided_slice %217 {offsets = [0, 1, 0], sizes = [2, 1, 60], strides = [1, 1, 1]} : vector<2x8x60xf32> to vector<2x1x60xf32>
    %229 = vector.shape_cast %228 : vector<2x1x60xf32> to vector<2x60xf32>
    %c2_89 = arith.constant 2 : index
    %c1_90 = arith.constant 1 : index
    %c0_91 = arith.constant 0 : index
    %c0_92 = arith.constant 0 : index
    %230 = vector.load %arg3[%c2_89, %c1_90, %c0_91, %c0_92] : memref<3x8x4x1xf32, #tpu.memory_space<vmem>>, vector<1x1x4x1xf32>
    %231 = vector.shape_cast %230 : vector<1x1x4x1xf32> to vector<4x1xf32>
    %232 = vector.shape_cast %229 : vector<2x60xf32> to vector<2x1x60xf32>
    %233 = vector.shape_cast %231 : vector<4x1xf32> to vector<1x4x1xf32>
    %234 = vector.broadcast %232 : vector<2x1x60xf32> to vector<2x4x60xf32>
    %235 = vector.broadcast %233 : vector<1x4x1xf32> to vector<2x4x60xf32>
    %236 = arith.mulf %234, %235 : vector<2x4x60xf32>
    %237 = arith.addf %227, %236 : vector<2x4x60xf32>
    %238 = vector.extract_strided_slice %217 {offsets = [0, 2, 0], sizes = [2, 1, 60], strides = [1, 1, 1]} : vector<2x8x60xf32> to vector<2x1x60xf32>
    %239 = vector.shape_cast %238 : vector<2x1x60xf32> to vector<2x60xf32>
    %c2_93 = arith.constant 2 : index
    %c2_94 = arith.constant 2 : index
    %c0_95 = arith.constant 0 : index
    %c0_96 = arith.constant 0 : index
    %240 = vector.load %arg3[%c2_93, %c2_94, %c0_95, %c0_96] : memref<3x8x4x1xf32, #tpu.memory_space<vmem>>, vector<1x1x4x1xf32>
    %241 = vector.shape_cast %240 : vector<1x1x4x1xf32> to vector<4x1xf32>
    %242 = vector.shape_cast %239 : vector<2x60xf32> to vector<2x1x60xf32>
    %243 = vector.shape_cast %241 : vector<4x1xf32> to vector<1x4x1xf32>
    %244 = vector.broadcast %242 : vector<2x1x60xf32> to vector<2x4x60xf32>
    %245 = vector.broadcast %243 : vector<1x4x1xf32> to vector<2x4x60xf32>
    %246 = arith.mulf %244, %245 : vector<2x4x60xf32>
    %247 = arith.addf %237, %246 : vector<2x4x60xf32>
    %248 = vector.extract_strided_slice %217 {offsets = [0, 3, 0], sizes = [2, 1, 60], strides = [1, 1, 1]} : vector<2x8x60xf32> to vector<2x1x60xf32>
    %249 = vector.shape_cast %248 : vector<2x1x60xf32> to vector<2x60xf32>
    %c2_97 = arith.constant 2 : index
    %c3_98 = arith.constant 3 : index
    %c0_99 = arith.constant 0 : index
    %c0_100 = arith.constant 0 : index
    %250 = vector.load %arg3[%c2_97, %c3_98, %c0_99, %c0_100] : memref<3x8x4x1xf32, #tpu.memory_space<vmem>>, vector<1x1x4x1xf32>
    %251 = vector.shape_cast %250 : vector<1x1x4x1xf32> to vector<4x1xf32>
    %252 = vector.shape_cast %249 : vector<2x60xf32> to vector<2x1x60xf32>
    %253 = vector.shape_cast %251 : vector<4x1xf32> to vector<1x4x1xf32>
    %254 = vector.broadcast %252 : vector<2x1x60xf32> to vector<2x4x60xf32>
    %255 = vector.broadcast %253 : vector<1x4x1xf32> to vector<2x4x60xf32>
    %256 = arith.mulf %254, %255 : vector<2x4x60xf32>
    %257 = arith.addf %247, %256 : vector<2x4x60xf32>
    %258 = vector.extract_strided_slice %217 {offsets = [0, 4, 0], sizes = [2, 1, 60], strides = [1, 1, 1]} : vector<2x8x60xf32> to vector<2x1x60xf32>
    %259 = vector.shape_cast %258 : vector<2x1x60xf32> to vector<2x60xf32>
    %c2_101 = arith.constant 2 : index
    %c4_102 = arith.constant 4 : index
    %c0_103 = arith.constant 0 : index
    %c0_104 = arith.constant 0 : index
    %260 = vector.load %arg3[%c2_101, %c4_102, %c0_103, %c0_104] : memref<3x8x4x1xf32, #tpu.memory_space<vmem>>, vector<1x1x4x1xf32>
    %261 = vector.shape_cast %260 : vector<1x1x4x1xf32> to vector<4x1xf32>
    %262 = vector.shape_cast %259 : vector<2x60xf32> to vector<2x1x60xf32>
    %263 = vector.shape_cast %261 : vector<4x1xf32> to vector<1x4x1xf32>
    %264 = vector.broadcast %262 : vector<2x1x60xf32> to vector<2x4x60xf32>
    %265 = vector.broadcast %263 : vector<1x4x1xf32> to vector<2x4x60xf32>
    %266 = arith.mulf %264, %265 : vector<2x4x60xf32>
    %267 = arith.addf %257, %266 : vector<2x4x60xf32>
    %268 = vector.extract_strided_slice %217 {offsets = [0, 5, 0], sizes = [2, 1, 60], strides = [1, 1, 1]} : vector<2x8x60xf32> to vector<2x1x60xf32>
    %269 = vector.shape_cast %268 : vector<2x1x60xf32> to vector<2x60xf32>
    %c2_105 = arith.constant 2 : index
    %c5_106 = arith.constant 5 : index
    %c0_107 = arith.constant 0 : index
    %c0_108 = arith.constant 0 : index
    %270 = vector.load %arg3[%c2_105, %c5_106, %c0_107, %c0_108] : memref<3x8x4x1xf32, #tpu.memory_space<vmem>>, vector<1x1x4x1xf32>
    %271 = vector.shape_cast %270 : vector<1x1x4x1xf32> to vector<4x1xf32>
    %272 = vector.shape_cast %269 : vector<2x60xf32> to vector<2x1x60xf32>
    %273 = vector.shape_cast %271 : vector<4x1xf32> to vector<1x4x1xf32>
    %274 = vector.broadcast %272 : vector<2x1x60xf32> to vector<2x4x60xf32>
    %275 = vector.broadcast %273 : vector<1x4x1xf32> to vector<2x4x60xf32>
    %276 = arith.mulf %274, %275 : vector<2x4x60xf32>
    %277 = arith.addf %267, %276 : vector<2x4x60xf32>
    %278 = vector.extract_strided_slice %217 {offsets = [0, 6, 0], sizes = [2, 1, 60], strides = [1, 1, 1]} : vector<2x8x60xf32> to vector<2x1x60xf32>
    %279 = vector.shape_cast %278 : vector<2x1x60xf32> to vector<2x60xf32>
    %c2_109 = arith.constant 2 : index
    %c6_110 = arith.constant 6 : index
    %c0_111 = arith.constant 0 : index
    %c0_112 = arith.constant 0 : index
    %280 = vector.load %arg3[%c2_109, %c6_110, %c0_111, %c0_112] : memref<3x8x4x1xf32, #tpu.memory_space<vmem>>, vector<1x1x4x1xf32>
    %281 = vector.shape_cast %280 : vector<1x1x4x1xf32> to vector<4x1xf32>
    %282 = vector.shape_cast %279 : vector<2x60xf32> to vector<2x1x60xf32>
    %283 = vector.shape_cast %281 : vector<4x1xf32> to vector<1x4x1xf32>
    %284 = vector.broadcast %282 : vector<2x1x60xf32> to vector<2x4x60xf32>
    %285 = vector.broadcast %283 : vector<1x4x1xf32> to vector<2x4x60xf32>
    %286 = arith.mulf %284, %285 : vector<2x4x60xf32>
    %287 = arith.addf %277, %286 : vector<2x4x60xf32>
    %288 = vector.extract_strided_slice %217 {offsets = [0, 7, 0], sizes = [2, 1, 60], strides = [1, 1, 1]} : vector<2x8x60xf32> to vector<2x1x60xf32>
    %289 = vector.shape_cast %288 : vector<2x1x60xf32> to vector<2x60xf32>
    %c2_113 = arith.constant 2 : index
    %c7_114 = arith.constant 7 : index
    %c0_115 = arith.constant 0 : index
    %c0_116 = arith.constant 0 : index
    %290 = vector.load %arg3[%c2_113, %c7_114, %c0_115, %c0_116] : memref<3x8x4x1xf32, #tpu.memory_space<vmem>>, vector<1x1x4x1xf32>
    %291 = vector.shape_cast %290 : vector<1x1x4x1xf32> to vector<4x1xf32>
    %292 = vector.shape_cast %289 : vector<2x60xf32> to vector<2x1x60xf32>
    %293 = vector.shape_cast %291 : vector<4x1xf32> to vector<1x4x1xf32>
    %294 = vector.broadcast %292 : vector<2x1x60xf32> to vector<2x4x60xf32>
    %295 = vector.broadcast %293 : vector<1x4x1xf32> to vector<2x4x60xf32>
    %296 = arith.mulf %294, %295 : vector<2x4x60xf32>
    %297 = arith.addf %287, %296 : vector<2x4x60xf32>
    %cst_117 = arith.constant 0.000000e+00 : f32
    %298 = vector.broadcast %cst_117 : f32 to vector<2x4x60xf32>
    %299 = arith.maximumf %297, %298 : vector<2x4x60xf32>
    %c0_118 = arith.constant 0 : index
    %c0_119 = arith.constant 0 : index
    %300 = vector.load %arg6[%c0_118, %c0_119] : memref<1x5xf32, #tpu.memory_space<vmem>>, vector<1x5xf32>
    %301 = vector.shape_cast %300 : vector<1x5xf32> to vector<1x5xf32>
    %302 = vector.broadcast %301 : vector<1x5xf32> to vector<2x5xf32>
    %303 = vector.extract_strided_slice %299 {offsets = [0, 0, 0], sizes = [2, 4, 30], strides = [1, 1, 1]} : vector<2x4x60xf32> to vector<2x4x30xf32>
    %cst_120 = arith.constant dense<0xFF800000> : vector<2x4xf32>
    %304 = vector.multi_reduction <maximumf>, %303, %cst_120 [2] : vector<2x4x30xf32> to vector<2x4xf32>
    %c0_121 = arith.constant 0 : index
    %c0_122 = arith.constant 0 : index
    %c0_123 = arith.constant 0 : index
    %305 = vector.load %arg5[%c0_121, %c0_122, %c0_123] : memref<2x5x4xf32, #tpu.memory_space<vmem>>, vector<1x5x4xf32>
    %306 = vector.shape_cast %305 : vector<1x5x4xf32> to vector<5x4xf32>
    %307 = vector.shape_cast %304 : vector<2x4xf32> to vector<2x1x4xf32>
    %308 = vector.shape_cast %306 : vector<5x4xf32> to vector<1x5x4xf32>
    %309 = vector.broadcast %307 : vector<2x1x4xf32> to vector<2x5x4xf32>
    %310 = vector.broadcast %308 : vector<1x5x4xf32> to vector<2x5x4xf32>
    %311 = arith.mulf %309, %310 : vector<2x5x4xf32>
    %cst_124 = arith.constant dense<0.000000e+00> : vector<2x5xf32>
    %312 = vector.multi_reduction <add>, %311, %cst_124 [2] : vector<2x5x4xf32> to vector<2x5xf32>
    %313 = arith.addf %302, %312 : vector<2x5xf32>
    %314 = vector.extract_strided_slice %299 {offsets = [0, 0, 30], sizes = [2, 4, 30], strides = [1, 1, 1]} : vector<2x4x60xf32> to vector<2x4x30xf32>
    %cst_125 = arith.constant dense<0xFF800000> : vector<2x4xf32>
    %315 = vector.multi_reduction <maximumf>, %314, %cst_125 [2] : vector<2x4x30xf32> to vector<2x4xf32>
    %c1_126 = arith.constant 1 : index
    %c0_127 = arith.constant 0 : index
    %c0_128 = arith.constant 0 : index
    %316 = vector.load %arg5[%c1_126, %c0_127, %c0_128] : memref<2x5x4xf32, #tpu.memory_space<vmem>>, vector<1x5x4xf32>
    %317 = vector.shape_cast %316 : vector<1x5x4xf32> to vector<5x4xf32>
    %318 = vector.shape_cast %315 : vector<2x4xf32> to vector<2x1x4xf32>
    %319 = vector.shape_cast %317 : vector<5x4xf32> to vector<1x5x4xf32>
    %320 = vector.broadcast %318 : vector<2x1x4xf32> to vector<2x5x4xf32>
    %321 = vector.broadcast %319 : vector<1x5x4xf32> to vector<2x5x4xf32>
    %322 = arith.mulf %320, %321 : vector<2x5x4xf32>
    %cst_129 = arith.constant dense<0.000000e+00> : vector<2x5xf32>
    %323 = vector.multi_reduction <add>, %322, %cst_129 [2] : vector<2x5x4xf32> to vector<2x5xf32>
    %324 = arith.addf %313, %323 : vector<2x5xf32>
    %cst_130 = arith.constant dense<0xFF800000> : vector<2xf32>
    %325 = vector.multi_reduction <maximumf>, %324, %cst_130 [1] : vector<2x5xf32> to vector<2xf32>
    %326 = vector.shape_cast %325 : vector<2xf32> to vector<2x1xf32>
    %327 = vector.broadcast %326 : vector<2x1xf32> to vector<2x5xf32>
    %328 = arith.subf %324, %327 : vector<2x5xf32>
    %329 = math.exp %328 : vector<2x5xf32>
    %cst_131 = arith.constant dense<0.000000e+00> : vector<2xf32>
    %330 = vector.multi_reduction <add>, %329, %cst_131 [1] : vector<2x5xf32> to vector<2xf32>
    %331 = vector.shape_cast %330 : vector<2xf32> to vector<2x1xf32>
    %332 = vector.broadcast %331 : vector<2x1xf32> to vector<2x5xf32>
    %333 = arith.divf %329, %332 : vector<2x5xf32>
    %c0_132 = arith.constant 0 : index
    %c0_133 = arith.constant 0 : index
    %334 = vector.load %arg7[%c0_132, %c0_133] : memref<2x5xf32, #tpu.memory_space<vmem>>, vector<2x5xf32>
    tpu.vector_store %arg7[%c0_132, %c0_133], %333 {strides = array<i32>} : memref<2x5xf32, #tpu.memory_space<vmem>>, vector<2x5xf32>,
    return
  }
}

</mosaic_0001>

<bundles_post_ra>
// kernel: tpu_custom_call.1
= control target key start
LH: loop header
LB: loop body
LE: loop exit
PB: predicated region body
PF: predicated region fallthrough
CT: control target
= control target key end

     0   :  { %v1177_v1 = vmov 3   ;;  %v1178_v2 = vmov 1   ;;  %v1179_v3 = vmov 2   ;;  %v1180_v4 = vmov 0   ;;  %s1620_s0 = inlined_call_operand.vmem [shape: f32[5,2,62], index: 0, kind: input, shape index: {}]   ;;  %s1621_s1 = inlined_call_operand.vmem [shape: f32[8,5], index: 1, kind: input, shape index: {}]   ;;  %s1622_s2 = inlined_call_operand.vmem [shape: f32[8,1], index: 2, kind: input, shape index: {}]   ;;  %s1623_s3 = inlined_call_operand.vmem [shape: f32[3,8,4,1], index: 3, kind: input, shape index: {}]   ;;  %s1624_s4 = inlined_call_operand.vmem [shape: f32[4,1], index: 4, kind: input, shape index: {}]   ;;  %s1625_s5 = inlined_call_operand.vmem [shape: f32[2,5,4], index: 5, kind: input, shape index: {}]   ;;  %s1626_s6 = inlined_call_operand.vmem [shape: f32[1,5], index: 6, kind: input, shape index: {}]   ;;  %s1627_s7 = inlined_call_operand.hbm [shape: f32[2,5], index: 7, kind: output, shape index: {}]  }
   0x1   :  { %v169_v0 = vld [vmem:[%s1621_s1] sm:$0xff]  ;;  %1145 = vset.pattern.permute.xlu0 %v1177_v1  ;;  %1143 = vset.pattern.permute.xlu1 %v1178_v2  ;;  %v1181_v6 = vmov 4  }
   0x2   :  { %205 = vperm.xlu0 %1145, %v169_v0   ;;  %115 = vperm.xlu1 %1143, %v169_v0   ;;  %v27_v5 = vld [vmem:[%s1622_s2] sm:$0xff] }
   0x6   :  { %1144 = vset.pattern.permute.xlu1 %v1179_v3  ;;  %1146 = vset.pattern.permute.xlu0 %v1180_v4 }
   0x7   :  { %160 = vperm.xlu1 %1144, %v169_v0   ;;  %70 = vperm.xlu0 %1146, %v169_v0  }
   0xb   :  { %1147 = vset.pattern.permute.xlu1 %v1181_v6  ;;  %30 = vperm.xlu0 %1146, %v27_v5  }
   0xc   :  { %12 = vsyncpa [#allocation3], 0  ;;  %250 = vperm.xlu1 %1147, %v169_v0   ;;  %v1117_v7 = vld [vmem:[%s1623_s3 + $0x24] sm:$0xf]  ;;  %v1116_v8 = vld [vmem:[%s1623_s3 + $0x20] sm:$0xf]  ;;  %v47_v11 = vlaneseq }
   0xd   :  { %v1120_v9 = vld [vmem:[%s1623_s3 + $0x30] sm:$0xf]  ;;  %v1118_v10 = vld [vmem:[%s1623_s3 + $0x28] sm:$0xf]  ;;  %v1122_v12 = vld [vmem:[%s1623_s3 + $0x38] sm:$0xf] }
   0xe   :  { %v1119_v13 = vld [vmem:[%s1623_s3 + $0x2c] sm:$0xf]  ;;  %v1250_v14 = vshrl.u32 %v47_v11, 7  ;;  %v829_v15 = vand.u32 127, %v47_v11  ;;  %v1124_v16 = vld [vmem:[%s1623_s3 + $0x40] sm:$0xf] }
   0xf   :  { %439 = vperm.xlu0 %1146, %v1117_v7   ;;  %v1121_v18 = vld [vmem:[%s1623_s3 + $0x34] sm:$0xf]  ;;  %v1126_v19 = vld [vmem:[%s1623_s3 + $0x48] sm:$0xf]  ;;  %v1123_v20 = vld [vmem:[%s1623_s3 + $0x3c] sm:$0xf] }
  0x10   :  { %1148 = vset.pattern.permute.xlu1 %v1180_v4  ;;  %v1256_v17 = vsub.s32 %v829_v15, %v1250_v14  ;;  %v1128_v21 = vld [vmem:[%s1623_s3 + $0x50] sm:$0xf]  ;;  %v1125_v22 = vld [vmem:[%s1623_s3 + $0x44] sm:$0xf]  ;;  %v1130_v23 = vld [vmem:[%s1623_s3 + $0x58] sm:$0xf] }
  0x11   :  { %420 = vperm.xlu1 %1148, %v1116_v8   ;;  %v1127_v24 = vld [vmem:[%s1623_s3 + $0x4c] sm:$0xf]  ;;  %v265_v25 = vld [vmem:[%s1623_s3] sm:$0xf]  ;;  %v1129_v26 = vld [vmem:[%s1623_s3 + $0x54] sm:$0xf] }
  0x12   :  { %v1109_v27 = vld [vmem:[%s1623_s3 + $0x4] sm:$0xf]  ;;  %v1131_v28 = vld [vmem:[%s1623_s3 + $0x5c] sm:$0xf]  ;;  %v1111_v29 = vld [vmem:[%s1623_s3 + $0xc] sm:$0xf] }
  0x13   :  { %496 = vperm.xlu0 %1146, %v1120_v9   ;;  %v259_v30 = vld [vmem:[%s1624_s4] sm:$0xf]  ;;  %v1113_v31 = vld [vmem:[%s1623_s3 + $0x14] sm:$0xf]  ;;  %v1110_v32 = vld [vmem:[%s1623_s3 + $0x8] sm:$0xf] }
  0x14   :  { %v1115_v33 = vld [vmem:[%s1623_s3 + $0x1c] sm:$0xf]  ;;  %v1112_v34 = vld [vmem:[%s1623_s3 + $0x10] sm:$0xf]  ;;  %v1114_v35 = vld [vmem:[%s1623_s3 + $0x18] sm:$0xf] }
  0x15   :  { %458 = vperm.xlu1 %1148, %v1118_v10   ;;  %v1182_v36 = vmov 1966171168   ;;  %v1100_v38 = vld.sshfl [vmem:[%s1620_s0] sm:$0x11 pattern:$0x75316420] }
  0x16   :  { %v45_v37 = vunpack.c.l.s4 %v1182_v36  ;;  %v1102_v40 = vld.sshfl [vmem:[%s1620_s0 + $0x2] sm:$0x11 pattern:$0x75316420]  ;;  %v43_v42 = vcombine.high %v1100_v38, %v1100_v38  ;;  %v1329_v56 = vsub.s32 0, %v1250_v14  ;;  %s1184_s11 = smov 126  }
  0x17   :  { %534 = vperm.xlu0 %1146, %v1122_v12   ;;  %v1104_v41 = vld.sshfl [vmem:[%s1620_s0 + $0x4] sm:$0x11 pattern:$0x75316420]  ;;  %v88_v44 = vcombine.high %v1102_v40, %v1102_v40  ;;  %vm729_vm0 = vcmask 240640   ;;  %vm904_vm1 = vcmask 486640  }
  0x18   :  { %v46_v39 = vunpack.c.0.s8 %v45_v37  ;;  %v1106_v43 = vld.sshfl [vmem:[%s1620_s0 + $0x6] sm:$0x11 pattern:$0x75316420]  ;;  %v133_v46 = vcombine.high %v1104_v41, %v1104_v41  ;;  %vm870_vm2 = vcmask 1041409   ;;  %vm872_vm3 = vcmask 1042434  }
  0x19   :  { %477 = vperm.xlu1 %1148, %v1119_v13   ;;  %v1108_v47 = vld.sshfl [vmem:[%s1620_s0 + $0x8] sm:$0x11 pattern:$0x75316420]  ;;  %v178_v49 = vcombine.high %v1106_v43, %v1106_v43  ;;  %s1183_s0 = smov 127   ;;  %vm874_vm4 = vcmask 1043459  }
  0x1a   :  { %v49_v45 = vsub.s32 %v46_v39, %v1250_v14  ;;  %v223_v55 = vcombine.high %v1108_v47, %v1108_v47  ;;  %vm876_vm5 = vcmask 1044484   ;;  %vm884_vm6 = vcmask 28672  }
  0x1b   :  { %572 = vperm.xlu0 %1146, %v1124_v16   ;;  %vm1073_vm7 = vcmask 33792  }
  0x1c   :  { %v50_v51 = vrot.slane %v1100_v38, %v49_v45  ;;  %v57_v52 = vrot.slane %v43_v42, %v49_v45  ;;  %v95_v53 = vrot.slane %v1102_v40, %v49_v45  ;;  %v102_v54 = vrot.slane %v88_v44, %v49_v45 }
  0x1d   :  { %515 = vperm.xlu1 %1148, %v1121_v18   ;;  %v140_v57 = vrot.slane %v1104_v41, %v49_v45  ;;  %v147_v58 = vrot.slane %v133_v46, %v49_v45  ;;  %v185_v59 = vrot.slane %v1106_v43, %v49_v45  ;;  %v192_v60 = vrot.slane %v178_v49, %v49_v45 }
  0x1e   :  { %v61_v61 = vrot.slane %v50_v51, %v1329_v56  ;;  %v65_v62 = vrot.slane %v57_v52, %v1329_v56  ;;  %v106_v63 = vrot.slane %v95_v53, %v1329_v56  ;;  %v110_v0 = vrot.slane %v102_v54, %v1329_v56 }
  0x1f   :  { %610 = vperm.xlu0 %1146, %v1126_v19   ;;  %v230_v3 = vrot.slane %v1108_v47, %v49_v45  ;;  %v237_v4 = vrot.slane %v223_v55, %v49_v45  ;;  %v151_v5 = vrot.slane %v140_v57, %v1329_v56  ;;  %v155_v6 = vrot.slane %v147_v58, %v1329_v56 }
  0x20   :  { %v196_v7 = vrot.slane %v185_v59, %v1329_v56  ;;  %v200_v8 = vrot.slane %v192_v60, %v1329_v56  ;;  %v1346_v41 = vsub.s32 1, %v1250_v14  ;;  %v1363_v49 = vsub.s32 2, %v1250_v14 }
  0x21   :  { %553 = vperm.xlu1 %1148, %v1123_v20   ;;  %v241_v15 = vrot.slane %v230_v3, %v1329_v56  ;;  %v245_v16 = vrot.slane %v237_v4, %v1329_v56  ;;  %v1379_v55 = vsub.s32 3, %v1250_v14 }
  0x23   :  { %648 = vperm.xlu0 %1146, %v1128_v21  }
  0x25   :  { %591 = vperm.xlu1 %1148, %v1125_v22  }
  0x27   :  { %686 = vperm.xlu0 %1146, %v1130_v23  }
  0x29   :  { %629 = vperm.xlu1 %1148, %v1127_v24  }
  0x2b   :  { %276 = vperm.xlu0 %1146, %v265_v25  }
  0x2d   :  { %667 = vperm.xlu1 %1148, %v1129_v26  }
  0x2f   :  { %295 = vperm.xlu0 %1146, %v1109_v27  }
  0x31   :  { %705 = vperm.xlu1 %1148, %v1131_v28  }
  0x33   :  { %333 = vperm.xlu0 %1146, %v1111_v29  }
  0x35   :  { %262 = vperm.xlu1 %1148, %v259_v30  }
  0x37   :  { %371 = vperm.xlu0 %1146, %v1113_v31  }
  0x39   :  { %314 = vperm.xlu1 %1148, %v1110_v32  }
  0x3b   :  { %409 = vperm.xlu0 %1146, %v1115_v33  }
  0x3d   :  { %352 = vperm.xlu1 %1148, %v1112_v34  }
  0x41   :  { %390 = vperm.xlu1 %1148, %v1114_v35  }
  0x81   :  { %v206_v48 = vpop.permute.xlu0 %205  ;;  %v116_v50 = vpop.permute.xlu1 %115 }
  0x82   :  { %v118_v11 = vmul.f32 %v116_v50, %v106_v63  ;;  %v119_v12 = vmul.f32 %v116_v50, %v110_v0  ;;  %v208_v25 = vmul.f32 %v206_v48, %v196_v7  ;;  %v209_v26 = vmul.f32 %v206_v48, %v200_v8 }
  0x86   :  { %v71_v1 = vpop.permute.xlu0 %70  ;;  %v161_v2 = vpop.permute.xlu1 %160 }
  0x87   :  { %v73_v9 = vmul.f32 %v71_v1, %v61_v61  ;;  %v74_v10 = vmul.f32 %v71_v1, %v65_v62  ;;  %v163_v18 = vmul.f32 %v161_v2, %v151_v5  ;;  %v164_v19 = vmul.f32 %v161_v2, %v155_v6 }
  0x88   :  { %v1391_v61 = vsub.s32 4, %v1250_v14 }
  0x8a   :  { %v31_v13 = vpop.permute.xlu0 %30 }
  0x8b   :  { %v75_v20 = vadd.f32 %v73_v9, %v31_v13  ;;  %v76_v21 = vadd.f32 %v74_v10, %v31_v13  ;;  %v251_v22 = vpop.permute.xlu1 %250  ;;  %v363_v9 = vsub.s32 5, %v1250_v14 }
  0x8c   :  { %v253_v30 = vmul.f32 %v251_v22, %v241_v15  ;;  %v254_v31 = vmul.f32 %v251_v22, %v245_v16 }
  0x8d   :  { %v120_v23 = vadd.f32 %v118_v11, %v75_v20  ;;  %v121_v24 = vadd.f32 %v119_v12, %v76_v21  ;;  %v382_v12 = vsub.s32 6, %v1250_v14 }
  0x8e   :  { %v440_v27 = vpop.permute.xlu0 %439 }
  0x8f   :  { %v165_v28 = vadd.f32 %v163_v18, %v120_v23  ;;  %v166_v29 = vadd.f32 %v164_v19, %v121_v24  ;;  %v401_v24 = vsub.s32 7, %v1250_v14 }
  0x90   :  { %v421_v32 = vpop.permute.xlu1 %420 }
  0x91   :  { %v210_v33 = vadd.f32 %v208_v25, %v165_v28  ;;  %v211_v34 = vadd.f32 %v209_v26, %v166_v29 }
  0x92   :  { %v497_v35 = vpop.permute.xlu0 %496 }
  0x93   :  { %v255_v36 = vadd.f32 %v253_v30, %v210_v33  ;;  %v256_v37 = vadd.f32 %v254_v31, %v211_v34 }
  0x94   :  { %v459_v38 = vpop.permute.xlu1 %458 }
  0x95   :  { %v1341_v39 = vmax.f32 %v255_v36, 0.0  ;;  %v1343_v40 = vmax.f32 %v256_v37, 0.0 }
  0x96   :  { %v535_v42 = vpop.permute.xlu0 %534 }
  0x97   :  { %v1350_v43 = vrot.slane %v1341_v39, %v1329_v56  ;;  %v1354_v44 = vrot.slane %v1343_v40, %v1329_v56  ;;  %v1358_v46 = vrot.slane %v1343_v40, %v1346_v41  ;;  %v1367_v50 = vrot.slane %v1341_v39, %v1346_v41 }
  0x98   :  { %v478_v45 = vpop.permute.xlu1 %477  ;;  %v1376_v54 = vrot.slane %v1343_v40, %v1363_v49  ;;  %v1384_v58 = vrot.slane %v1341_v39, %v1363_v49  ;;  %v1396_v63 = vrot.slane %v1343_v40, %v1379_v55  ;;  %v1401_v1 = vrot.slane %v1341_v39, %v1379_v55 }
  0x99   :  { %v423_v47 = vmul.f32 %v421_v32, %v1350_v43  ;;  %v424_v48 = vmul.f32 %v421_v32, %v1354_v44  ;;  %v443_v53 = vmul.f32 %v440_v27, %v1358_v46  ;;  %v442_v57 = vmul.f32 %v440_v27, %v1367_v50 }
  0x9a   :  { %v1369_v51 = vpop.permute.xlu0 %572  ;;  %v462_v62 = vmul.f32 %v459_v38, %v1376_v54  ;;  %v461_v0 = vmul.f32 %v459_v38, %v1384_v58  ;;  %v1411_v4 = vrot.slane %v1343_v40, %v1391_v61  ;;  %v481_v5 = vmul.f32 %v478_v45, %v1396_v63 }
  0x9b   :  { %429 = vrot.lane.b32.xlu0 %v424_v48, %s1183_s0  ;;  %427 = vrot.lane.b32.xlu1 %v423_v47, %s1183_s0  ;;  %v1416_v6 = vrot.slane %v1341_v39, %v1391_v61  ;;  %v480_v7 = vmul.f32 %v478_v45, %v1401_v1  ;;  %v1430_v16 = vrot.slane %v1343_v40, %v363_v9 }
  0x9c   :  { %v516_v52 = vpop.permute.xlu1 %515  ;;  %v500_v11 = vmul.f32 %v497_v35, %v1411_v4  ;;  %v1434_v18 = vrot.slane %v1341_v39, %v363_v9  ;;  %v1440_v20 = vrot.slane %v1343_v40, %v382_v12  ;;  %v1444_v22 = vrot.slane %v1341_v39, %v382_v12 }
  0x9d   :  { %v499_v13 = vmul.f32 %v497_v35, %v1416_v6  ;;  %v519_v21 = vmul.f32 %v516_v52, %v1430_v16  ;;  %v1455_v29 = vrot.slane %v1343_v40, %v401_v24  ;;  %v1461_v14 = vrot.slane %v1341_v39, %v401_v24 }
  0x9e   :  { %v1386_v59 = vpop.permute.xlu0 %610  ;;  %v518_v23 = vmul.f32 %v516_v52, %v1434_v18  ;;  %v538_v27 = vmul.f32 %v535_v42, %v1440_v20  ;;  %v537_v28 = vmul.f32 %v535_v42, %v1444_v22  ;;  %v576_v47 = vmul.f32 %v1369_v51, %v1354_v44 }
  0x9f   :  { %448 = vrot.lane.b32.xlu0 %v443_v53, %s1183_s0  ;;  %446 = vrot.lane.b32.xlu1 %v442_v57, %s1183_s0  ;;  %v575_v53 = vmul.f32 %v1369_v51, %v1350_v43 }
  0xa0   :  { %v554_v60 = vpop.permute.xlu1 %553 }
  0xa1   :  { %v557_v32 = vmul.f32 %v554_v60, %v1455_v29  ;;  %v556_v40 = vmul.f32 %v554_v60, %v1461_v14 }
  0xa2   :  { %v1403_v2 = vpop.permute.xlu0 %648 }
  0xa3   :  { %467 = vrot.lane.b32.xlu0 %v462_v62, %s1183_s0  ;;  %465 = vrot.lane.b32.xlu1 %v461_v0, %s1183_s0 }
  0xa4   :  { %v1407_v3 = vpop.permute.xlu1 %591 }
  0xa5   :  { %v594_v12 = vmul.f32 %v1407_v3, %v1367_v50 }
  0xa6   :  { %v1419_v8 = vpop.permute.xlu0 %686 }
  0xa7   :  { %486 = vrot.lane.b32.xlu0 %v481_v5, %s1183_s0  ;;  %484 = vrot.lane.b32.xlu1 %v480_v7, %s1183_s0 }
  0xa8   :  { %v1424_v10 = vpop.permute.xlu1 %629 }
  0xaa   :  { %v277_v15 = vpop.permute.xlu0 %276 }
  0xab   :  { %505 = vrot.lane.b32.xlu0 %v500_v11, %s1183_s0  ;;  %503 = vrot.lane.b32.xlu1 %v499_v13, %s1183_s0  ;;  %v279_v30 = vmul.f32 %v277_v15, %v1350_v43  ;;  %v280_v31 = vmul.f32 %v277_v15, %v1354_v44  ;;  %v595_v44 = vmul.f32 %v1407_v3, %v1358_v46 }
  0xac   :  { %v1437_v19 = vpop.permute.xlu1 %667  ;;  %v613_v3 = vmul.f32 %v1386_v59, %v1384_v58 }
  0xae   :  { %v296_v25 = vpop.permute.xlu0 %295 }
  0xaf   :  { %524 = vrot.lane.b32.xlu0 %v519_v21, %s1183_s0  ;;  %522 = vrot.lane.b32.xlu1 %v518_v23, %s1183_s0  ;;  %v298_v35 = vmul.f32 %v296_v25, %v1367_v50  ;;  %v299_v36 = vmul.f32 %v296_v25, %v1358_v46  ;;  %v614_v46 = vmul.f32 %v1386_v59, %v1376_v54 }
  0xb0   :  { %v1450_v26 = vpop.permute.xlu1 %705  ;;  %v651_v59 = vmul.f32 %v1403_v2, %v1416_v6 }
  0xb2   :  { %v334_v33 = vpop.permute.xlu0 %333 }
  0xb3   :  { %543 = vrot.lane.b32.xlu0 %v538_v27, %s1183_s0  ;;  %541 = vrot.lane.b32.xlu1 %v537_v28, %s1183_s0  ;;  %v336_v60 = vmul.f32 %v334_v33, %v1401_v1  ;;  %v337_v62 = vmul.f32 %v334_v33, %v1396_v63 }
  0xb4   :  { %v263_v34 = vpop.permute.xlu1 %262 }
  0xb5   :  { %v281_v37 = vadd.f32 %v279_v30, %v263_v34  ;;  %v282_v38 = vadd.f32 %v280_v31, %v263_v34 }
  0xb6   :  { %v372_v57 = vpop.permute.xlu0 %371 }
  0xb7   :  { %v300_v42 = vadd.f32 %v298_v35, %v281_v37  ;;  %v301_v45 = vadd.f32 %v299_v36, %v282_v38  ;;  %562 = vrot.lane.b32.xlu0 %v557_v32, %s1183_s0  ;;  %560 = vrot.lane.b32.xlu1 %v556_v40, %s1183_s0  ;;  %v374_v13 = vmul.f32 %v372_v57, %v1434_v18 }
  0xb8   :  { %v315_v39 = vpop.permute.xlu1 %314  ;;  %v375_v15 = vmul.f32 %v372_v57, %v1430_v16  ;;  %v632_v37 = vmul.f32 %v1424_v10, %v1401_v1  ;;  %v670_v1 = vmul.f32 %v1437_v19, %v1434_v18  ;;  %v736_v18 = vld [vmem:[%s1625_s5] sm:$0x1f] }
  0xb9   :  { %v317_v48 = vmul.f32 %v315_v39, %v1384_v58  ;;  %v318_v52 = vmul.f32 %v315_v39, %v1376_v54  ;;  %v633_v54 = vmul.f32 %v1424_v10, %v1396_v63  ;;  %v652_v58 = vmul.f32 %v1403_v2, %v1411_v4 }
  0xba   :  { %v410_v24 = vpop.permute.xlu0 %409  ;;  %v671_v63 = vmul.f32 %v1437_v19, %v1430_v16  ;;  %v689_v2 = vmul.f32 %v1419_v8, %v1444_v22  ;;  %v709_v16 = vmul.f32 %v1450_v26, %v1455_v29  ;;  %v741_v19 = vrot.slane %v736_v18, %v1329_v56 }
  0xbb   :  { %v319_v0 = vadd.f32 %v317_v48, %v300_v42  ;;  %v320_v5 = vadd.f32 %v318_v52, %v301_v45  ;;  %581 = vrot.lane.b32.xlu0 %v576_v47, %s1184_s11  ;;  %579 = vrot.lane.b32.xlu1 %v575_v53, %s1184_s11  ;;  %v412_v31 = vmul.f32 %v410_v24, %v1461_v14 }
  0xbc   :  { %v353_v7 = vpop.permute.xlu1 %352  ;;  %v413_v32 = vmul.f32 %v410_v24, %v1455_v29  ;;  %v755_v29 = vrot.slane %v736_v18, %v1363_v49  ;;  %v769_v40 = vrot.slane %v736_v18, %v1391_v61 }
  0xbd   :  { %v338_v9 = vadd.f32 %v336_v60, %v319_v0  ;;  %v339_v11 = vadd.f32 %v337_v62, %v320_v5  ;;  %v355_v43 = vmul.f32 %v353_v7, %v1416_v6  ;;  %v356_v51 = vmul.f32 %v353_v7, %v1411_v4  ;;  %v1526_v6 = vld [vmem:[%s1625_s5 + $0x8] sm:$0x1f] }
  0xbe   :  { %v690_v4 = vmul.f32 %v1419_v8, %v1440_v20  ;;  %v938_v10 = vrot.slane %v1526_v6, %v1379_v55  ;;  %v708_v8 = vmul.f32 %v1450_v26, %v1461_v14  ;;  %v924_v38 = vrot.slane %v1526_v6, %v1346_v41 }
  0xbf   :  { %v357_v21 = vadd.f32 %v355_v43, %v338_v9  ;;  %v358_v23 = vadd.f32 %v356_v51, %v339_v11  ;;  %600 = vrot.lane.b32.xlu0 %v595_v44, %s1184_s11  ;;  %598 = vrot.lane.b32.xlu1 %v594_v12, %s1184_s11  ;;  %v917_v26 = vrot.slane %v1526_v6, %v1329_v56 }
  0xc0   :  { %v391_v25 = vpop.permute.xlu1 %390  ;;  %v931_v14 = vrot.slane %v1526_v6, %v1363_v49 }
  0xc1   :  { %v376_v27 = vadd.f32 %v374_v13, %v357_v21  ;;  %v377_v28 = vadd.f32 %v375_v15, %v358_v23  ;;  %v393_v30 = vmul.f32 %v391_v25, %v1444_v22  ;;  %v394_v50 = vmul.f32 %v391_v25, %v1440_v20 }
  0xc2   :  { %v748_v20 = vrot.slane %v736_v18, %v1346_v41  ;;  %v762_v22 = vrot.slane %v736_v18, %v1379_v55 }
  0xc3   :  { %v395_v33 = vadd.f32 %v393_v30, %v376_v27  ;;  %v396_v34 = vadd.f32 %v394_v50, %v377_v28  ;;  %619 = vrot.lane.b32.xlu0 %v614_v46, %s1184_s11  ;;  %617 = vrot.lane.b32.xlu1 %v613_v3, %s1184_s11 }
  0xc5   :  { %v414_v35 = vadd.f32 %v412_v31, %v395_v33  ;;  %v415_v36 = vadd.f32 %v413_v32, %v396_v34 }
  0xc7   :  { %638 = vrot.lane.b32.xlu0 %v633_v54, %s1184_s11  ;;  %636 = vrot.lane.b32.xlu1 %v632_v37, %s1184_s11 }
  0xcb   :  { %657 = vrot.lane.b32.xlu0 %v652_v58, %s1184_s11  ;;  %655 = vrot.lane.b32.xlu1 %v651_v59, %s1184_s11 }
  0xcf   :  { %676 = vrot.lane.b32.xlu0 %v671_v63, %s1184_s11  ;;  %674 = vrot.lane.b32.xlu1 %v670_v1, %s1184_s11 }
  0xd3   :  { %695 = vrot.lane.b32.xlu0 %v690_v4, %s1184_s11  ;;  %693 = vrot.lane.b32.xlu1 %v689_v2, %s1184_s11 }
  0xd7   :  { %714 = vrot.lane.b32.xlu0 %v709_v16, %s1184_s11  ;;  %712 = vrot.lane.b32.xlu1 %v708_v8, %s1184_s11 }
  0xdb   :  { %743 = vbcast.lane.b32.xlu0 %v741_v19, 256  ;;  %750 = vbcast.lane.b32.xlu1 %v748_v20, 256 }
  0xdf   :  { %764 = vbcast.lane.b32.xlu0 %v762_v22, 256  ;;  %757 = vbcast.lane.b32.xlu1 %v755_v29, 256 }
  0xe3   :  { %926 = vbcast.lane.b32.xlu0 %v924_v38, 256  ;;  %919 = vbcast.lane.b32.xlu1 %v917_v26, 256 }
  0xe7   :  { %933 = vbcast.lane.b32.xlu0 %v931_v14, 256  ;;  %771 = vbcast.lane.b32.xlu1 %v769_v40, 256 }
 0x10d   :  { %v430_v42 = vpop.permute.xlu0 %429  ;;  %v428_v45 = vpop.permute.xlu1 %427 }
 0x10e   :  { %v434_v7 = vadd.f32 %v430_v42, %v415_v36  ;;  %v433_v9 = vadd.f32 %v428_v45, %v414_v35 }
 0x111   :  { %v449_v39 = vpop.permute.xlu0 %448  ;;  %v447_v47 = vpop.permute.xlu1 %446 }
 0x112   :  { %v453_v43 = vadd.f32 %v449_v39, %v434_v7  ;;  %v452_v12 = vadd.f32 %v447_v47, %v433_v9 }
 0x115   :  { %v468_v48 = vpop.permute.xlu0 %467  ;;  %v466_v52 = vpop.permute.xlu1 %465 }
 0x116   :  { %v472_v13 = vadd.f32 %v468_v48, %v453_v43  ;;  %v471_v15 = vadd.f32 %v466_v52, %v452_v12 }
 0x119   :  { %v487_v41 = vpop.permute.xlu0 %486  ;;  %v485_v53 = vpop.permute.xlu1 %484 }
 0x11a   :  { %v491_v23 = vadd.f32 %v487_v41, %v472_v13  ;;  %v490_v24 = vadd.f32 %v485_v53, %v471_v15 }
 0x11d   :  { %v506_v57 = vpop.permute.xlu0 %505  ;;  %v504_v60 = vpop.permute.xlu1 %503 }
 0x11e   :  { %v510_v25 = vadd.f32 %v506_v57, %v491_v23  ;;  %v509_v27 = vadd.f32 %v504_v60, %v490_v24 }
 0x121   :  { %v525_v56 = vpop.permute.xlu0 %524  ;;  %v523_v62 = vpop.permute.xlu1 %522 }
 0x122   :  { %v529_v30 = vadd.f32 %v525_v56, %v510_v25  ;;  %v528_v3 = vadd.f32 %v523_v62, %v509_v27  ;;  %v945_v62 = vrot.slane %v1526_v6, %v1391_v61 }
 0x125   :  { %v544_v0 = vpop.permute.xlu0 %543  ;;  %v542_v5 = vpop.permute.xlu1 %541 }
 0x126   :  { %v548_v31 = vadd.f32 %v544_v0, %v529_v30  ;;  %v547_v32 = vadd.f32 %v542_v5, %v528_v3 }
 0x129   :  { %v563_v49 = vpop.permute.xlu0 %562  ;;  %v561_v44 = vpop.permute.xlu1 %560 }
 0x12a   :  { %v567_v34 = vadd.f32 %v563_v49, %v548_v31  ;;  %v566_v35 = vadd.f32 %v561_v44, %v547_v32 }
 0x12d   :  { %v582_v11 = vpop.permute.xlu0 %581  ;;  %v580_v51 = vpop.permute.xlu1 %579 }
 0x12e   :  { %v586_v36 = vadd.f32 %v582_v11, %v567_v34  ;;  %v585_v37 = vadd.f32 %v580_v51, %v566_v35 }
 0x131   :  { %v601_v21 = vpop.permute.xlu0 %600  ;;  %v599_v46 = vpop.permute.xlu1 %598 }
 0x132   :  { %v605_v59 = vadd.f32 %v601_v21, %v586_v36  ;;  %v604_v1 = vadd.f32 %v599_v46, %v585_v37 }
 0x135   :  { %v620_v28 = vpop.permute.xlu0 %619  ;;  %v618_v50 = vpop.permute.xlu1 %617 }
 0x136   :  { %v624_v4 = vadd.f32 %v620_v28, %v605_v59  ;;  %v623_v2 = vadd.f32 %v618_v50, %v604_v1 }
 0x139   :  { %v639_v33 = vpop.permute.xlu0 %638  ;;  %v637_v54 = vpop.permute.xlu1 %636 }
 0x13a   :  { %v643_v18 = vadd.f32 %v639_v33, %v624_v4  ;;  %v642_v19 = vadd.f32 %v637_v54, %v623_v2 }
 0x13d   :  { %v658_v58 = vpop.permute.xlu0 %657  ;;  %v656_v63 = vpop.permute.xlu1 %655 }
 0x13e   :  { %v662_v20 = vadd.f32 %v658_v58, %v643_v18  ;;  %v661_v22 = vadd.f32 %v656_v63, %v642_v19 }
 0x141   :  { %v677_v16 = vpop.permute.xlu0 %676  ;;  %v675_v8 = vpop.permute.xlu1 %674 }
 0x142   :  { %v681_v38 = vadd.f32 %v677_v16, %v662_v20  ;;  %v680_v14 = vadd.f32 %v675_v8, %v661_v22 }
 0x145   :  { %v696_v29 = vpop.permute.xlu0 %695  ;;  %v694_v26 = vpop.permute.xlu1 %693 }
 0x146   :  { %v700_v40 = vadd.f32 %v696_v29, %v681_v38  ;;  %v699_v42 = vadd.f32 %v694_v26, %v680_v14 }
 0x149   :  { %v715_v45 = vpop.permute.xlu0 %714  ;;  %v713_v39 = vpop.permute.xlu1 %712 }
 0x14a   :  { %v719_v47 = vadd.f32 %v715_v45, %v700_v40  ;;  %v718_v48 = vadd.f32 %v713_v39, %v699_v42 }
 0x14c   :  { %v721_v52 = vmax.f32 %v719_v47, 0.0  ;;  %v720_v41 = vmax.f32 %v718_v48, 0.0 }
 0x14d   :  { %v751_v0 = vpop.permute.xlu1 %750  ;;  %v744_v5 = vpop.permute.xlu0 %743 }
 0x14e   :  { %v733_v53 = vsel %vm729_vm0, %v721_v52, -inf  ;;  %v730_v57 = vsel %vm729_vm0, %v720_v41, -inf  ;;  %v905_v60 = vsel %vm904_vm1, %v720_v41, -inf  ;;  %v908_v56 = vsel %vm904_vm1, %v721_v52, -inf }
 0x14f   :  { %734 = vmax.xlane.f32.xlu0 %v733_v53  ;;  %731 = vmax.xlane.f32.xlu1 %v730_v57 }
 0x151   :  { %v758_v49 = vpop.permute.xlu1 %757  ;;  %v765_v44 = vpop.permute.xlu0 %764 }
 0x153   :  { %906 = vmax.xlane.f32.xlu0 %v905_v60  ;;  %909 = vmax.xlane.f32.xlu1 %v908_v56 }
 0x155   :  { %v920_v7 = vpop.permute.xlu1 %919  ;;  %v927_v9 = vpop.permute.xlu0 %926 }
 0x159   :  { %v772_v11 = vpop.permute.xlu1 %771  ;;  %v934_v43 = vpop.permute.xlu0 %933 }
 0x164   :  { %940 = vbcast.lane.b32.xlu1 %v938_v10, 256 }
 0x169   :  { %947 = vbcast.lane.b32.xlu0 %v945_v62, 256 }
 0x1dc   :  { %v732_v51 = vpop.xlane.xlu1 %731  ;;  %v735_v15 = vpop.xlane.xlu0 %734 }
 0x1dd   :  { %v779_v12 = vmul.f32 %v751_v0, %v732_v51  ;;  %v778_v13 = vmul.f32 %v744_v5, %v732_v51  ;;  %v784_v55 = vmul.f32 %v751_v0, %v735_v15  ;;  %v783_v10 = vmul.f32 %v744_v5, %v735_v15 }
 0x1de   :  { %v785_v61 = vmul.f32 %v758_v49, %v735_v15  ;;  %v780_v6 = vmul.f32 %v758_v49, %v732_v51  ;;  %v786_v21 = vmul.f32 %v765_v44, %v735_v15  ;;  %v781_v23 = vmul.f32 %v765_v44, %v732_v51 }
 0x1df   :  { %802 = vperm.xlu0 %1146, %v779_v12   ;;  %799 = vperm.xlu1 %1148, %v778_v13   ;;  %v787_v50 = vmul.f32 %v772_v11, %v735_v15  ;;  %v782_v3 = vmul.f32 %v772_v11, %v732_v51 }
 0x1e0   :  { %v907_v46 = vpop.xlane.xlu0 %906  ;;  %v910_v27 = vpop.xlane.xlu1 %909 }
 0x1e1   :  { %v955_v24 = vmul.f32 %v927_v9, %v907_v46  ;;  %v954_v25 = vmul.f32 %v920_v7, %v907_v46  ;;  %v960_v28 = vmul.f32 %v927_v9, %v910_v27  ;;  %v959_v30 = vmul.f32 %v920_v7, %v910_v27 }
 0x1e2   :  { %v961_v31 = vmul.f32 %v934_v43, %v910_v27  ;;  %v956_v32 = vmul.f32 %v934_v43, %v907_v46 }
 0x1e3   :  { %817 = vperm.xlu0 %1146, %v784_v55   ;;  %814 = vperm.xlu1 %1148, %v783_v10  }
 0x1e4   :  { %v941_v33 = vpop.permute.xlu1 %940  ;;  %v948_v35 = vpop.permute.xlu0 %947 }
 0x1e5   :  { %v957_v34 = vmul.f32 %v941_v33, %v907_v46  ;;  %v962_v54 = vmul.f32 %v941_v33, %v910_v27  ;;  %v958_v36 = vmul.f32 %v948_v35, %v907_v46  ;;  %v963_v37 = vmul.f32 %v948_v35, %v910_v27 }
 0x1e7   :  { %820 = vperm.xlu0 %1146, %v785_v61   ;;  %805 = vperm.xlu1 %1148, %v780_v6  }
 0x1eb   :  { %823 = vperm.xlu0 %1146, %v786_v21   ;;  %808 = vperm.xlu1 %1148, %v781_v23  }
 0x1ef   :  { %978 = vperm.xlu0 %1146, %v955_v24   ;;  %975 = vperm.xlu1 %1148, %v954_v25  }
 0x1f3   :  { %993 = vperm.xlu0 %1146, %v960_v28   ;;  %990 = vperm.xlu1 %1148, %v959_v30  }
 0x1f7   :  { %826 = vperm.xlu0 %1146, %v787_v50   ;;  %811 = vperm.xlu1 %1148, %v782_v3  }
 0x1fb   :  { %996 = vperm.xlu0 %1146, %v961_v31   ;;  %981 = vperm.xlu1 %1148, %v956_v32  }
 0x1ff   :  { %999 = vperm.xlu0 %1146, %v962_v54   ;;  %984 = vperm.xlu1 %1148, %v957_v34  }
 0x203   :  { %1002 = vperm.xlu0 %1146, %v963_v37   ;;  %987 = vperm.xlu1 %1148, %v958_v36  }
 0x25e   :  { %v800_v58 = vpop.permute.xlu1 %799  ;;  %v803_v59 = vpop.permute.xlu0 %802 }
 0x25f   :  { %v833_v20 = vrot.slane %v800_v58, %v1256_v17  ;;  %v837_v22 = vrot.slane %v803_v59, %v1256_v17 }
 0x261   :  { %v871_v47 = vsel %vm870_vm2, %v837_v22, %v833_v20 }
 0x262   :  { %v815_v63 = vpop.permute.xlu1 %814  ;;  %v818_v1 = vpop.permute.xlu0 %817 }
 0x263   :  { %v853_v29 = vrot.slane %v815_v63, %v1256_v17  ;;  %v857_v38 = vrot.slane %v818_v1, %v1256_v17  ;;  %v1132_v63 = vld [vmem:[%s1626_s6] ss:$0 sm:$0xff]  ;;  %s1185_s6 = smov [#allocation2]  }
 0x264   :  { %s1092_s17 = sshll.u32 %s1185_s6, 4  ;;  %s1093_s17 = int_to_ptr.vmem [resolvable:$true] %s1092_s17 }
 0x265   :  { %v878_v48 = vsel %vm870_vm2, %v857_v38, %v853_v29  ;;  %s1153_s18 = scalar_lea.vmem %s1093_s17, 32  ;;  %p1158_p1 = scmp.lt.s32.totalorder %s1093_s17, %s1093_s17 }
 0x266   :  { %v806_v4 = vpop.permute.xlu1 %805  ;;  %v821_v2 = vpop.permute.xlu0 %820  ;;  %p1154_p0 = scmp.ne.s32.totalorder %s1093_s17, %s1153_s18  ;;  %p1159_p2 = scmp.lt.s32.totalorder %s1153_s18, %s1153_s18 }
 0x267   :  { %v841_v40 = vrot.slane %v806_v4, %v1256_v17  ;;  %v861_v42 = vrot.slane %v821_v2, %v1256_v17 }
 0x268   :  { %p1160_p3 = por %p1159_p2, %p1158_p1 }
 0x269   :  { %v873_v53 = vsel %vm872_vm3, %v841_v40, %v871_v47  ;;  %v879_v57 = vsel %vm872_vm3, %v861_v42, %v878_v48 }
 0x26a   :  { %v809_v16 = vpop.permute.xlu1 %808  ;;  %v824_v18 = vpop.permute.xlu0 %823  ;;  %p1161_p4 = pnand %p1160_p3, %p1154_p0 }
 0x26b   :  { %v845_v45 = vrot.slane %v809_v16, %v1256_v17  ;;  %v865_v39 = vrot.slane %v824_v18, %v1256_v17 }
 0x26d   :  { %v875_v62 = vsel %vm874_vm4, %v845_v45, %v873_v53  ;;  %v880_v0 = vsel %vm874_vm4, %v865_v39, %v879_v57 }
 0x26e   :  { %v976_v8 = vpop.permute.xlu1 %975  ;;  %v979_v19 = vpop.permute.xlu0 %978 }
 0x26f   :  { %v1007_v43 = vrot.slane %v976_v8, %v1256_v17  ;;  %v1011_v51 = vrot.slane %v979_v19, %v1256_v17 }
 0x271   :  { %v1044_v23 = vsel %vm870_vm2, %v1011_v51, %v1007_v43 }
 0x272   :  { %v991_v26 = vpop.permute.xlu1 %990  ;;  %v994_v14 = vpop.permute.xlu0 %993 }
 0x273   :  { %v1027_v12 = vrot.slane %v991_v26, %v1256_v17  ;;  %v1031_v13 = vrot.slane %v994_v14, %v1256_v17 }
 0x275   :  { %v1048_v46 = vsel %vm870_vm2, %v1031_v13, %v1027_v12 }
 0x276   :  { %v812_v52 = vpop.permute.xlu1 %811  ;;  %v827_v41 = vpop.permute.xlu0 %826 }
 0x277   :  { %v849_v60 = vrot.slane %v812_v52, %v1256_v17  ;;  %v869_v56 = vrot.slane %v827_v41, %v1256_v17 }
 0x279   :  { %v877_v5 = vsel %vm876_vm5, %v849_v60, %v875_v62  ;;  %v881_v49 = vsel %vm876_vm5, %v869_v56, %v880_v0 }
 0x27a   :  { %v982_v44 = vpop.permute.xlu1 %981  ;;  %v997_v7 = vpop.permute.xlu0 %996  ;;  %v885_v9 = vsel %vm884_vm6, %v877_v5, 0.0  ;;  %v888_v11 = vsel %vm884_vm6, %v881_v49, 0.0 }
 0x27b   :  { %886 = vadd.xlane.f32.xlu1 %v885_v9  ;;  %889 = vadd.xlane.f32.xlu0 %v888_v11  ;;  %v1015_v10 = vrot.slane %v982_v44, %v1256_v17  ;;  %v1035_v61 = vrot.slane %v997_v7, %v1256_v17 }
 0x27d   :  { %v1045_v27 = vsel %vm872_vm3, %v1015_v10, %v1044_v23  ;;  %v1049_v28 = vsel %vm872_vm3, %v1035_v61, %v1048_v46 }
 0x27e   :  { %v985_v15 = vpop.permute.xlu1 %984  ;;  %v1000_v55 = vpop.permute.xlu0 %999 }
 0x27f   :  { %v1019_v6 = vrot.slane %v985_v15, %v1256_v17  ;;  %v1039_v21 = vrot.slane %v1000_v55, %v1256_v17 }
 0x281   :  { %v1046_v3 = vsel %vm874_vm4, %v1019_v6, %v1045_v27  ;;  %v1050_v31 = vsel %vm874_vm4, %v1039_v21, %v1049_v28 }
 0x282   :  { %v988_v24 = vpop.permute.xlu1 %987  ;;  %v1003_v25 = vpop.permute.xlu0 %1002 }
 0x283   :  { %v1023_v30 = vrot.slane %v988_v24, %v1256_v17  ;;  %v1043_v50 = vrot.slane %v1003_v25, %v1256_v17 }
 0x285   :  { %v1047_v32 = vsel %vm876_vm5, %v1023_v30, %v1046_v3  ;;  %v1051_v33 = vsel %vm876_vm5, %v1043_v50, %v1050_v31 }
 0x286   :  { %v1054_v34 = vsel %vm884_vm6, %v1047_v32, 0.0  ;;  %v1057_v54 = vsel %vm884_vm6, %v1051_v33, 0.0 }
 0x287   :  { %1055 = vadd.xlane.f32.xlu0 %v1054_v34  ;;  %1058 = vadd.xlane.f32.xlu1 %v1057_v54 }
 0x308   :  { %v887_v35 = vpop.xlane.xlu1 %886  ;;  %v890_v36 = vpop.xlane.xlu0 %889 }
 0x309   :  { %v896_v37 = vrot.slane %v887_v35, %v1256_v17  ;;  %v900_v58 = vrot.slane %v890_v36, %v1256_v17 }
 0x30b   :  { %v901_v59 = vsel %vm870_vm2, %v900_v58, %v896_v37 }
 0x30c   :  { %v903_v18 = vadd.f32 %v1132_v63, %v901_v59 }
 0x314   :  { %v1059_v1 = vpop.xlane.xlu1 %1058  ;;  %v1056_v4 = vpop.xlane.xlu0 %1055 }
 0x315   :  { %v1069_v2 = vrot.slane %v1059_v1, %v1256_v17  ;;  %v1065_v16 = vrot.slane %v1056_v4, %v1256_v17 }
 0x317   :  { %v1070_v8 = vsel %vm870_vm2, %v1069_v2, %v1065_v16 }
 0x318   :  { %v1072_v19 = vadd.f32 %v1070_v8, %v903_v18 }
 0x31a   :  { %v1074_v20 = vsel %vm1073_vm7, %v1072_v19, -inf }
 0x31b   :  { %1075 = vmax.xlane.f32.xlu0 %v1074_v20 }
 0x3a8   :  { %v1076_v22 = vpop.xlane.xlu0 %1075 }
 0x3a9   :  { %v1077_v29 = vsub.f32 %v1072_v19, %v1076_v22 }
 0x3ab   :  { %v1078_v38 = vmul.f32 1.442695, %v1077_v29 }
 0x3ad   :  { %1149 = vpow2.f32 %v1078_v38 }
 0x3b7   :  { %v1150_v26 = vpop.eup %1149 }
 0x3b8   :  { %v1080_v14 = vsel %vm1073_vm7, %v1150_v26, 0.0 }
 0x3b9   :  { %1081 = vadd.xlane.f32.xlu1 %v1080_v14 }
 0x446   :  { %v1082_v40 = vpop.xlane.xlu1 %1081 }
 0x447   :  { %1151 = vrcp.f32 %v1082_v40 }
 0x451   :  { %v1152_v17 = vpop.eup %1151 }
 0x452   :  { %v1084_v42 = vmul.f32 %v1152_v17, %v1150_v26 }
 0x454   :  { %1085 = vst.msk [vmem:[#allocation2] sm:$0x3] %vm1073_vm7, %v1084_v42 }
 0x455   :  { %1164 = shalt.err (!%p1161_p4)
}
 0x456   :  { %s1165_s21 = scalar_lea.hbm %s1627_s7, 32 }
 0x457   :  { %p1166_p5 = scmp.ne.s32.totalorder %s1627_s7, %s1165_s21  ;;  %p1169_p6 = scmp.lt.u32.totalorder %s1165_s21, %s1627_s7 }
 0x459   :  { %p1171_p7 = pnand %p1169_p6, %p1166_p5 }
 0x45b   :  { %1174 = shalt.err (!%p1171_p7)
}
 0x45c   :  { %1095 = dma.vmem_to_hbm [thread:$0]  %s1093_s17, 32, %s1627_s7, [#allocation3]  }
 0x45d   :  { %1175 = dma.done.wait [#allocation3], 32  }
 0x45e   :  { %1176 = vsyncadd [#allocation3], 4294967264 }
 0x45f   :  { %1099 = vsyncpa [#allocation3], 1 }

</bundles_post_ra>
